<compile_context>
chip_gen: v7x
topology: tpu7x:2x2x1
jax: 0.10.0
libtpu: 0.0.40
codegen_flags: <defaults>
</compile_context>

<pallas_src>
import math

import numpy as np
import jax
import jax.numpy as jnp
from jax.experimental import pallas as pl
from jax.experimental.pallas import tpu as pltpu


def _round_up(x, m):
    return ((x + m - 1) // m) * m


# ----------------------------------------------------------------------------
# In-kernel math helpers (all f32 — safe on v5e which has no bf16 VPU/EUP)
# ----------------------------------------------------------------------------

def _mlp_head_math(x, w1, b1, gamma, beta, w2, b2):
    """get_mlp_head: Linear -> ReLU -> LayerNorm(eps=1e-12) -> Dropout(eval=id) -> Linear."""
    h = jnp.dot(x, w1, preferred_element_type=jnp.float32) + b1
    h = jnp.maximum(h, 0.0)
    mu = jnp.mean(h, axis=-1, keepdims=True)
    var = jnp.mean((h - mu) ** 2, axis=-1, keepdims=True)
    hn = (h - mu) * jax.lax.rsqrt(var + 1e-12) * gamma + beta
    return jnp.dot(hn, w2, preferred_element_type=jnp.float32) + b2


# ----------------------------------------------------------------------------
# Fused object-path kernel: encoder surrogates + all object heads + og3d mask
# ----------------------------------------------------------------------------

def _make_obj_kernel(head_specs, out_pad):
    """head_specs: list of (name, out_dim, apply_mask, src) with src in {'out','pre'}."""
    n_heads = len(head_specs)
    total = sum(s[1] for s in head_specs)

    def kernel(*refs):
        obj_ref, loc_ref, mask_ref = refs[0], refs[1], refs[2]
        we, be, wl, bl, wm, bm = refs[3:9]
        head_refs = refs[9:9 + 6 * n_heads]
        o_ref = refs[-1]

        # TODO(synk): GTObjEncoder/PcdObjEncoder, CMT/MMT not provided; linear surrogates.
        obj_emb = jnp.dot(obj_ref[...], we[...], preferred_element_type=jnp.float32) + be[...]
        loc_emb = jnp.dot(loc_ref[...], wl[...], preferred_element_type=jnp.float32) + bl[...]
        out_emb = jnp.dot(obj_emb + loc_emb, wm[...], preferred_element_type=jnp.float32) + bm[...]

        keep = mask_ref[...] != 0
        pieces = []
        for h, (_name, _odim, apply_mask, src) in enumerate(head_specs):
            w1, b1, g, bt, w2, b2 = head_refs[6 * h: 6 * h + 6]
            x = out_emb if src == 'out' else obj_emb
            y = _mlp_head_math(x, w1[...], b1[...], g[...], bt[...], w2[...], b2[...])
            if apply_mask:
                # fused og3d_logits.masked_fill_(~obj_masks, -inf)
                y = jnp.where(keep, y, -jnp.inf)
            pieces.append(y)
        if out_pad > total:
            pieces.append(jnp.zeros((obj_ref.shape[0], out_pad - total), jnp.float32))
        # single lane-dense store of the packed head slab
        o_ref[...] = jnp.concatenate(pieces, axis=-1).astype(o_ref.dtype)

    return kernel


def fused_obj_heads_forward(params, batch, cfg, block_n=256):
    B, Nobj, Fobj = batch['obj_fts'].shape
    H = cfg['hidden_size']
    C = cfg['num_obj_classes']
    dloc = cfg['dim_loc']
    N = B * Nobj

    # heads executed in the fused kernel (og3d always present)
    head_specs = [('og3d', 1, True, 'out')]
    head_params = [params['og3d_head']]
    if cfg['losses']['obj3d_clf'] > 0:
        head_specs.append(('obj3d_clf', C, False, 'out'))
        head_params.append(params['obj3d_clf_head'])
    if cfg['losses']['obj3d_reg'] > 0:
        head_specs.append(('obj3d_reg', 6, False, 'out'))
        head_params.append(params['obj3d_reg_head'])
    if cfg['losses']['obj3d_clf_pre'] > 0:
        head_specs.append(('obj3d_clf_pre', C, False, 'pre'))
        head_params.append(params['obj3d_clf_pre_head'])

    o_total = sum(s[1] for s in head_specs)
    o_pad = _round_up(o_total, 128)            # lane-dense output slab

    bn = min(block_n, _round_up(N, 8))         # row tile, multiple of 8
    Np = _round_up(N, bn)                      # pad rows instead of whole-array fallback

    def padrows(x2d):
        return jnp.pad(x2d, ((0, Np - N), (0, 0))) if Np != N else x2d

    obj2d = padrows(batch['obj_fts'].reshape(N, Fobj))
    loc2d = padrows(batch['obj_locs'].reshape(N, dloc))
    mask2d = padrows(batch['obj_masks'].reshape(N, 1).astype(jnp.int32))

    # TODO(synk): for production shapes store weights in bf16 (MXU) and single-buffer
    # constant operands (pipeline_mode=pl.Buffered(1)) to free VMEM on v7x.
    enc_args = [params['obj_enc']['w'], params['obj_enc']['b'].reshape(1, H),
                params['loc_enc']['w'], params['loc_enc']['b'].reshape(1, H),
                params['mm_enc']['w'], params['mm_enc']['b'].reshape(1, H)]
    head_args = []
    for p in head_params:
        Hh = p['w1'].shape[1]
        O = p['w2'].shape[1]
        head_args += [p['w1'], p['b1'].reshape(1, Hh), p['gamma'].reshape(1, Hh),
                      p['beta'].reshape(1, Hh), p['w2'], p['b2'].reshape(1, O)]

    def row_spec(d):
        return pl.BlockSpec((bn, d), lambda i: (i, 0))

    def const_spec(a):
        return pl.BlockSpec(a.shape, lambda i: (0, 0))

    in_specs = [row_spec(Fobj), row_spec(dloc), row_spec(1)]
    in_specs += [const_spec(a) for a in enc_args]
    in_specs += [const_spec(a) for a in head_args]

    out = pl.pallas_call(
        _make_obj_kernel(head_specs, o_pad),
        out_shape=jax.ShapeDtypeStruct((Np, o_pad), jnp.float32),
        grid=(Np // bn,),
        in_specs=in_specs,
        out_specs=pl.BlockSpec((bn, o_pad), lambda i: (i, 0)),
        compiler_params=pltpu.CompilerParams(dimension_semantics=("parallel",)),
    )(obj2d, loc2d, mask2d, *enc_args, *head_args)

    out = out[:N]
    results = {}
    col = 0
    for name, odim, _, _ in head_specs:
        results[name] = out[:, col:col + odim]
        col += odim
    return results


# ----------------------------------------------------------------------------
# Fused txt path kernel: txt-encoder surrogate + txt_clf head on the CLS token
# ----------------------------------------------------------------------------

def _make_txt_kernel(odim, o_pad):
    def kernel(x_ref, wt, bt, w1, b1, g, beta, w2, b2, o_ref):
        t = jnp.dot(x_ref[...], wt[...], preferred_element_type=jnp.float32) + bt[...]
        y = _mlp_head_math(t, w1[...], b1[...], g[...], beta[...], w2[...], b2[...])
        if o_pad > odim:
            y = jnp.concatenate(
                [y, jnp.zeros((y.shape[0], o_pad - odim), jnp.float32)], axis=-1)
        o_ref[...] = y.astype(o_ref.dtype)
    return kernel


def fused_txt_clf_forward(params, txt_cls_tok, cfg):
    B, Et = txt_cls_tok.shape
    H = cfg['hidden_size']
    C = cfg['num_obj_classes']
    o_pad = _round_up(C, 128)
    bn = _round_up(B, 8)
    x = jnp.pad(txt_cls_tok, ((0, bn - B), (0, 0))) if bn != B else txt_cls_tok

    p = params['txt_clf_head']
    Hh = p['w1'].shape[1]
    args = [params['txt_enc']['w'], params['txt_enc']['b'].reshape(1, H),
            p['w1'], p['b1'].reshape(1, Hh), p['gamma'].reshape(1, Hh),
            p['beta'].reshape(1, Hh), p['w2'], p['b2'].reshape(1, C)]

    out = pl.pallas_call(
        _make_txt_kernel(C, o_pad),
        out_shape=jax.ShapeDtypeStruct((bn, o_pad), jnp.float32),
        grid=(1,),
        in_specs=[pl.BlockSpec((bn, Et), lambda i: (0, 0))]
                 + [pl.BlockSpec(a.shape, lambda i: (0, 0)) for a in args],
        out_specs=pl.BlockSpec((bn, o_pad), lambda i: (0, 0)),
        compiler_params=pltpu.CompilerParams(dimension_semantics=("arbitrary",)),
    )(x, *args)
    return out[:B, :C]


# ----------------------------------------------------------------------------
# Deterministic parameter init (mirrors nn.Linear / nn.LayerNorm defaults)
# ----------------------------------------------------------------------------

def init_linear(key, din, dout):
    k1, k2 = jax.random.split(key)
    lim = 1.0 / math.sqrt(din)
    w = jax.random.uniform(k1, (din, dout), jnp.float32, -lim, lim)
    b = jax.random.uniform(k2, (dout,), jnp.float32, -lim, lim)
    return {'w': w, 'b': b}


def init_mlp_head(key, input_size, hidden_size, output_size):
    k1, k2 = jax.random.split(key)
    l1 = init_linear(k1, input_size, hidden_size // 2)
    l2 = init_linear(k2, hidden_size // 2, output_size)
    return {
        'w1': l1['w'], 'b1': l1['b'],
        'gamma': jnp.ones((hidden_size // 2,), jnp.float32),
        'beta': jnp.zeros((hidden_size // 2,), jnp.float32),
        'w2': l2['w'], 'b2': l2['b'],
    }


def init_params(key, cfg):
    H, C, Fobj, Et, vocab = (cfg['hidden_size'], cfg['num_obj_classes'],
                             cfg['obj_ft_dim'], cfg['txt_emb_dim'], cfg['vocab_size'])
    keys = jax.random.split(key, 12)
    return {
        # TODO(synk): full GTObjEncoder / PcdObjEncoder not provided; linear surrogate.
        'obj_enc': init_linear(keys[0], Fobj, H),
        # TODO(synk): full BertModel text encoder not provided; embedding + linear surrogate.
        'txt_emb_table': 0.02 * jax.random.normal(keys[1], (vocab, Et), jnp.float32),
        'txt_enc': init_linear(keys[2], Et, H),
        # TODO(synk): full CMT/MMT multimodal transformer not provided; loc-proj + fusion linear surrogate.
        'loc_enc': init_linear(keys[3], cfg['dim_loc'], H),
        'mm_enc': init_linear(keys[4], H, H),
        # heads defined in ReferIt3DNet.__init__ (get_mlp_head)
        'og3d_head': init_mlp_head(keys[5], H, H, 1),
        'obj3d_clf_head': init_mlp_head(keys[6], H, H, C),
        'obj3d_clf_pre_head': init_mlp_head(keys[7], H, H, C),
        'obj3d_reg_head': init_mlp_head(keys[8], H, H, 6),
        'txt_clf_head': init_mlp_head(keys[9], H, H, C),
    }


# ----------------------------------------------------------------------------
# ReferIt3DNet forward (eval mode: dropout=identity, no compute_loss)
# ----------------------------------------------------------------------------

def referit3d_forward(params, batch, cfg, block_n=256):
    B, Nobj, _ = batch['obj_fts'].shape
    C = cfg['num_obj_classes']

    obj_out = fused_obj_heads_forward(params, batch, cfg, block_n=block_n)

    og3d_logits = obj_out['og3d'].reshape(B, Nobj)
    result = {
        'og3d_logits': og3d_logits,
        'og3d_logits_ori': og3d_logits,
        # No 'txt_masks_mask' in batch -> out_embeds_mask IS out_embeds, so the masked
        # og3d pass is bitwise-identical; reuse instead of recomputing (review item).
        'og3d_logits_mask': og3d_logits,
    }
    if cfg['losses']['obj3d_clf'] > 0:
        result['obj3d_clf_logits'] = obj_out['obj3d_clf'].reshape(B, Nobj, C)
    if cfg['losses']['obj3d_reg'] > 0:
        result['obj3d_loc_preds'] = obj_out['obj3d_reg'].reshape(B, Nobj, 6)
    if cfg['losses']['obj3d_clf_pre'] > 0:
        result['obj3d_clf_pre_logits'] = obj_out['obj3d_clf_pre'].reshape(B, Nobj, C)
    if cfg['losses']['txt_clf'] > 0:
        # TODO(synk): BERT not provided; token-embedding lookup (JAX glue) + linear surrogate,
        # txt_clf only consumes the CLS token so only that row is encoded.
        txt_cls = params['txt_emb_table'][batch['txt_ids'][:, 0]]
        result['txt_clf_logits'] = fused_txt_clf_forward(params, txt_cls, cfg)
    return result


# ----------------------------------------------------------------------------
# Pure-JAX reference (for correctness check of the Pallas kernels)
# ----------------------------------------------------------------------------

def _ref_mlp_head(p, x):
    h = jnp.maximum(x @ p['w1'] + p['b1'], 0.0)
    mu = jnp.mean(h, axis=-1, keepdims=True)
    var = jnp.mean((h - mu) ** 2, axis=-1, keepdims=True)
    hn = (h - mu) * jax.lax.rsqrt(var + 1e-12) * p['gamma'] + p['beta']
    return hn @ p['w2'] + p['b2']


def _ref_forward(params, batch, cfg):
    obj_embeds = batch['obj_fts'] @ params['obj_enc']['w'] + params['obj_enc']['b']
    loc_feats = batch['obj_locs'] @ params['loc_enc']['w'] + params['loc_enc']['b']
    out_obj = (obj_embeds + loc_feats) @ params['mm_enc']['w'] + params['mm_enc']['b']
    txt_cls = params['txt_emb_table'][batch['txt_ids'][:, 0]]
    txt_emb = txt_cls @ params['txt_enc']['w'] + params['txt_enc']['b']
    og3d = _ref_mlp_head(params['og3d_head'], out_obj)[..., 0]
    og3d = jnp.where(batch['obj_masks'], og3d, -jnp.inf)
    return {
        'og3d_logits': og3d,
        'obj3d_clf_logits': _ref_mlp_head(params['obj3d_clf_head'], out_obj),
        'obj3d_loc_preds': _ref_mlp_head(params['obj3d_reg_head'], out_obj),
        'obj3d_clf_pre_logits': _ref_mlp_head(params['obj3d_clf_pre_head'], obj_embeds),
        'txt_clf_logits': _ref_mlp_head(params['txt_clf_head'], txt_emb),
    }


# ----------------------------------------------------------------------------
# Main
# ----------------------------------------------------------------------------

if __name__ == "__main__":
    cfg = {
        'hidden_size': 128,        # lane-aligned hidden dim (review: avoid 32-wide lanes)
        'num_obj_classes': 10,
        'obj_ft_dim': 32,
        'txt_emb_dim': 32,
        'vocab_size': 50,
        'dim_loc': 6,
        'losses': {'obj3d_clf': 1.0, 'obj3d_clf_pre': 1.0, 'obj3d_reg': 1.0, 'txt_clf': 1.0},
    }
    B, Nobj, L = 2, 8, 8

    key = jax.random.PRNGKey(0)
    kp, k1, k2, k3 = jax.random.split(key, 4)
    params = init_params(kp, cfg)

    batch = {
        'obj_fts': jax.random.normal(k1, (B, Nobj, cfg['obj_ft_dim']), jnp.float32),
        'obj_locs': jax.random.normal(k2, (B, Nobj, cfg['dim_loc']), jnp.float32),
        'obj_masks': jnp.array([[1, 1, 1, 1, 1, 1, 1, 1],
                                [1, 1, 1, 1, 1, 1, 0, 0]], dtype=bool),
        'txt_ids': jax.random.randint(k3, (B, L), 0, cfg['vocab_size']),
        'txt_masks': jnp.ones((B, L), dtype=bool),
    }

    result = referit3d_forward(params, batch, cfg)
    result = jax.tree_util.tree_map(jax.block_until_ready, result)

    # correctness check against pure-JAX reference
    ref = _ref_forward(params, batch, cfg)
    for name in ['og3d_logits', 'obj3d_clf_logits', 'obj3d_loc_preds',
                 'obj3d_clf_pre_logits', 'txt_clf_logits']:
        np.testing.assert_allclose(np.asarray(result[name]), np.asarray(ref[name]),
                                   rtol=1e-4, atol=1e-4)
    assert np.all(np.isneginf(np.asarray(result['og3d_logits'])[1, 6:]))
    assert np.array_equal(np.asarray(result['og3d_logits']),
                          np.asarray(result['og3d_logits_mask']))

    print("KERNEL_OK")
</pallas_src>

<mosaic_0001>
module attributes {stable_mosaic.version = 11 : i64} {
  func.func @kernel(%arg0: i32, %arg1: memref<16x32xf32, #tpu.memory_space<vmem>>, %arg2: memref<16x6xf32, #tpu.memory_space<vmem>>, %arg3: memref<16x1xi32, #tpu.memory_space<vmem>>, %arg4: memref<32x128xf32, #tpu.memory_space<vmem>>, %arg5: memref<1x128xf32, #tpu.memory_space<vmem>>, %arg6: memref<6x128xf32, #tpu.memory_space<vmem>>, %arg7: memref<1x128xf32, #tpu.memory_space<vmem>>, %arg8: memref<128x128xf32, #tpu.memory_space<vmem>>, %arg9: memref<1x128xf32, #tpu.memory_space<vmem>>, %arg10: memref<128x64xf32, #tpu.memory_space<vmem>>, %arg11: memref<1x64xf32, #tpu.memory_space<vmem>>, %arg12: memref<1x64xf32, #tpu.memory_space<vmem>>, %arg13: memref<1x64xf32, #tpu.memory_space<vmem>>, %arg14: memref<64x1xf32, #tpu.memory_space<vmem>>, %arg15: memref<1x1xf32, #tpu.memory_space<vmem>>, %arg16: memref<128x64xf32, #tpu.memory_space<vmem>>, %arg17: memref<1x64xf32, #tpu.memory_space<vmem>>, %arg18: memref<1x64xf32, #tpu.memory_space<vmem>>, %arg19: memref<1x64xf32, #tpu.memory_space<vmem>>, %arg20: memref<64x10xf32, #tpu.memory_space<vmem>>, %arg21: memref<1x10xf32, #tpu.memory_space<vmem>>, %arg22: memref<128x64xf32, #tpu.memory_space<vmem>>, %arg23: memref<1x64xf32, #tpu.memory_space<vmem>>, %arg24: memref<1x64xf32, #tpu.memory_space<vmem>>, %arg25: memref<1x64xf32, #tpu.memory_space<vmem>>, %arg26: memref<64x6xf32, #tpu.memory_space<vmem>>, %arg27: memref<1x6xf32, #tpu.memory_space<vmem>>, %arg28: memref<128x64xf32, #tpu.memory_space<vmem>>, %arg29: memref<1x64xf32, #tpu.memory_space<vmem>>, %arg30: memref<1x64xf32, #tpu.memory_space<vmem>>, %arg31: memref<1x64xf32, #tpu.memory_space<vmem>>, %arg32: memref<64x10xf32, #tpu.memory_space<vmem>>, %arg33: memref<1x10xf32, #tpu.memory_space<vmem>>, %arg34: memref<16x128xf32, #tpu.memory_space<vmem>>) attributes {dimension_semantics = [#tpu.dimension_semantics<parallel>], iteration_bounds = array<i64: 1>, scalar_prefetch = 0 : i64, scratch_operands = 0 : i64, tpu.core_type = #tpu.core_type<tc>, window_params = [{transform_indices = @transform_0, window_bounds = array<i64: 16, 32>}, {transform_indices = @transform_1, window_bounds = array<i64: 16, 6>}, {transform_indices = @transform_2, window_bounds = array<i64: 16, 1>}, {pipeline_mode = #tpu.pipeline_mode<synchronous>, transform_indices = @transform_3, window_bounds = array<i64: 32, 128>}, {pipeline_mode = #tpu.pipeline_mode<synchronous>, transform_indices = @transform_4, window_bounds = array<i64: 1, 128>}, {pipeline_mode = #tpu.pipeline_mode<synchronous>, transform_indices = @transform_5, window_bounds = array<i64: 6, 128>}, {pipeline_mode = #tpu.pipeline_mode<synchronous>, transform_indices = @transform_6, window_bounds = array<i64: 1, 128>}, {pipeline_mode = #tpu.pipeline_mode<synchronous>, transform_indices = @transform_7, window_bounds = array<i64: 128, 128>}, {pipeline_mode = #tpu.pipeline_mode<synchronous>, transform_indices = @transform_8, window_bounds = array<i64: 1, 128>}, {pipeline_mode = #tpu.pipeline_mode<synchronous>, transform_indices = @transform_9, window_bounds = array<i64: 128, 64>}, {pipeline_mode = #tpu.pipeline_mode<synchronous>, transform_indices = @transform_10, window_bounds = array<i64: 1, 64>}, {pipeline_mode = #tpu.pipeline_mode<synchronous>, transform_indices = @transform_11, window_bounds = array<i64: 1, 64>}, {pipeline_mode = #tpu.pipeline_mode<synchronous>, transform_indices = @transform_12, window_bounds = array<i64: 1, 64>}, {pipeline_mode = #tpu.pipeline_mode<synchronous>, transform_indices = @transform_13, window_bounds = array<i64: 64, 1>}, {pipeline_mode = #tpu.pipeline_mode<synchronous>, transform_indices = @transform_14, window_bounds = array<i64: 1, 1>}, {pipeline_mode = #tpu.pipeline_mode<synchronous>, transform_indices = @transform_15, window_bounds = array<i64: 128, 64>}, {pipeline_mode = #tpu.pipeline_mode<synchronous>, transform_indices = @transform_16, window_bounds = array<i64: 1, 64>}, {pipeline_mode = #tpu.pipeline_mode<synchronous>, transform_indices = @transform_17, window_bounds = array<i64: 1, 64>}, {pipeline_mode = #tpu.pipeline_mode<synchronous>, transform_indices = @transform_18, window_bounds = array<i64: 1, 64>}, {pipeline_mode = #tpu.pipeline_mode<synchronous>, transform_indices = @transform_19, window_bounds = array<i64: 64, 10>}, {pipeline_mode = #tpu.pipeline_mode<synchronous>, transform_indices = @transform_20, window_bounds = array<i64: 1, 10>}, {pipeline_mode = #tpu.pipeline_mode<synchronous>, transform_indices = @transform_21, window_bounds = array<i64: 128, 64>}, {pipeline_mode = #tpu.pipeline_mode<synchronous>, transform_indices = @transform_22, window_bounds = array<i64: 1, 64>}, {pipeline_mode = #tpu.pipeline_mode<synchronous>, transform_indices = @transform_23, window_bounds = array<i64: 1, 64>}, {pipeline_mode = #tpu.pipeline_mode<synchronous>, transform_indices = @transform_24, window_bounds = array<i64: 1, 64>}, {pipeline_mode = #tpu.pipeline_mode<synchronous>, transform_indices = @transform_25, window_bounds = array<i64: 64, 6>}, {pipeline_mode = #tpu.pipeline_mode<synchronous>, transform_indices = @transform_26, window_bounds = array<i64: 1, 6>}, {pipeline_mode = #tpu.pipeline_mode<synchronous>, transform_indices = @transform_27, window_bounds = array<i64: 128, 64>}, {pipeline_mode = #tpu.pipeline_mode<synchronous>, transform_indices = @transform_28, window_bounds = array<i64: 1, 64>}, {pipeline_mode = #tpu.pipeline_mode<synchronous>, transform_indices = @transform_29, window_bounds = array<i64: 1, 64>}, {pipeline_mode = #tpu.pipeline_mode<synchronous>, transform_indices = @transform_30, window_bounds = array<i64: 1, 64>}, {pipeline_mode = #tpu.pipeline_mode<synchronous>, transform_indices = @transform_31, window_bounds = array<i64: 64, 10>}, {pipeline_mode = #tpu.pipeline_mode<synchronous>, transform_indices = @transform_32, window_bounds = array<i64: 1, 10>}, {transform_indices = @transform_33, window_bounds = array<i64: 16, 128>}]} {
    %c0 = arith.constant 0 : index
    %c0_0 = arith.constant 0 : index
    %0 = vector.load %arg1[%c0, %c0_0] : memref<16x32xf32, #tpu.memory_space<vmem>>, vector<16x32xf32>
    %c0_1 = arith.constant 0 : index
    %c0_2 = arith.constant 0 : index
    %1 = vector.load %arg4[%c0_1, %c0_2] : memref<32x128xf32, #tpu.memory_space<vmem>>, vector<32x128xf32>
    %cst = arith.constant dense<0.000000e+00> : vector<16x128xf32>
    %2 = tpu.matmul %0, %1, %cst {dimension_numbers = #tpu.dot_dimension_numbers<[1], [0], [0], [1], [0, 0, 1, 1], [], []>} : vector<16x32xf32>, vector<32x128xf32>, vector<16x128xf32> -> vector<16x128xf32>
    %c0_3 = arith.constant 0 : index
    %c0_4 = arith.constant 0 : index
    %3 = vector.load %arg5[%c0_3, %c0_4] : memref<1x128xf32, #tpu.memory_space<vmem>>, vector<1x128xf32>
    %4 = vector.broadcast %3 : vector<1x128xf32> to vector<16x128xf32>
    %5 = arith.addf %2, %4 : vector<16x128xf32>
    %c0_5 = arith.constant 0 : index
    %c0_6 = arith.constant 0 : index
    %6 = vector.load %arg2[%c0_5, %c0_6] : memref<16x6xf32, #tpu.memory_space<vmem>>, vector<16x6xf32>
    %c0_7 = arith.constant 0 : index
    %c0_8 = arith.constant 0 : index
    %7 = vector.load %arg6[%c0_7, %c0_8] : memref<6x128xf32, #tpu.memory_space<vmem>>, vector<6x128xf32>
    %cst_9 = arith.constant dense<0.000000e+00> : vector<16x128xf32>
    %8 = tpu.matmul %6, %7, %cst_9 {dimension_numbers = #tpu.dot_dimension_numbers<[1], [0], [0], [1], [0, 0, 1, 1], [], []>} : vector<16x6xf32>, vector<6x128xf32>, vector<16x128xf32> -> vector<16x128xf32>
    %c0_10 = arith.constant 0 : index
    %c0_11 = arith.constant 0 : index
    %9 = vector.load %arg7[%c0_10, %c0_11] : memref<1x128xf32, #tpu.memory_space<vmem>>, vector<1x128xf32>
    %10 = vector.broadcast %9 : vector<1x128xf32> to vector<16x128xf32>
    %11 = arith.addf %8, %10 : vector<16x128xf32>
    %12 = arith.addf %5, %11 : vector<16x128xf32>
    %c0_12 = arith.constant 0 : index
    %c0_13 = arith.constant 0 : index
    %13 = vector.load %arg8[%c0_12, %c0_13] : memref<128x128xf32, #tpu.memory_space<vmem>>, vector<128x128xf32>
    %cst_14 = arith.constant dense<0.000000e+00> : vector<16x128xf32>
    %14 = tpu.matmul %12, %13, %cst_14 {dimension_numbers = #tpu.dot_dimension_numbers<[1], [0], [0], [1], [0, 0, 1, 1], [], []>} : vector<16x128xf32>, vector<128x128xf32>, vector<16x128xf32> -> vector<16x128xf32>
    %c0_15 = arith.constant 0 : index
    %c0_16 = arith.constant 0 : index
    %15 = vector.load %arg9[%c0_15, %c0_16] : memref<1x128xf32, #tpu.memory_space<vmem>>, vector<1x128xf32>
    %16 = vector.broadcast %15 : vector<1x128xf32> to vector<16x128xf32>
    %17 = arith.addf %14, %16 : vector<16x128xf32>
    %c0_17 = arith.constant 0 : index
    %c0_18 = arith.constant 0 : index
    %18 = vector.load %arg3[%c0_17, %c0_18] : memref<16x1xi32, #tpu.memory_space<vmem>>, vector<16x1xi32>
    %c0_i32 = arith.constant 0 : i32
    %19 = vector.broadcast %c0_i32 : i32 to vector<16x1xi32>
    %20 = arith.cmpi ne, %18, %19 : vector<16x1xi32>
    %c0_19 = arith.constant 0 : index
    %c0_20 = arith.constant 0 : index
    %21 = vector.load %arg10[%c0_19, %c0_20] : memref<128x64xf32, #tpu.memory_space<vmem>>, vector<128x64xf32>
    %c0_21 = arith.constant 0 : index
    %c0_22 = arith.constant 0 : index
    %22 = vector.load %arg11[%c0_21, %c0_22] : memref<1x64xf32, #tpu.memory_space<vmem>>, vector<1x64xf32>
    %c0_23 = arith.constant 0 : index
    %c0_24 = arith.constant 0 : index
    %23 = vector.load %arg12[%c0_23, %c0_24] : memref<1x64xf32, #tpu.memory_space<vmem>>, vector<1x64xf32>
    %c0_25 = arith.constant 0 : index
    %c0_26 = arith.constant 0 : index
    %24 = vector.load %arg13[%c0_25, %c0_26] : memref<1x64xf32, #tpu.memory_space<vmem>>, vector<1x64xf32>
    %c0_27 = arith.constant 0 : index
    %c0_28 = arith.constant 0 : index
    %25 = vector.load %arg14[%c0_27, %c0_28] : memref<64x1xf32, #tpu.memory_space<vmem>>, vector<64x1xf32>
    %c0_29 = arith.constant 0 : index
    %c0_30 = arith.constant 0 : index
    %26 = vector.load %arg15[%c0_29, %c0_30] : memref<1x1xf32, #tpu.memory_space<vmem>>, vector<1x1xf32>
    %cst_31 = arith.constant dense<0.000000e+00> : vector<16x64xf32>
    %27 = tpu.matmul %17, %21, %cst_31 {dimension_numbers = #tpu.dot_dimension_numbers<[1], [0], [0], [1], [0, 0, 1, 1], [], []>} : vector<16x128xf32>, vector<128x64xf32>, vector<16x64xf32> -> vector<16x64xf32>
    %28 = vector.broadcast %22 : vector<1x64xf32> to vector<16x64xf32>
    %29 = arith.addf %27, %28 : vector<16x64xf32>
    %cst_32 = arith.constant 0.000000e+00 : f32
    %30 = vector.broadcast %cst_32 : f32 to vector<16x64xf32>
    %31 = arith.maximumf %29, %30 : vector<16x64xf32>
    %cst_33 = arith.constant dense<0.000000e+00> : vector<16xf32>
    %32 = vector.multi_reduction <add>, %31, %cst_33 [1] : vector<16x64xf32> to vector<16xf32>
    %33 = vector.shape_cast %32 : vector<16xf32> to vector<16x1xf32>
    %cst_34 = arith.constant 6.400000e+01 : f32
    %34 = vector.broadcast %cst_34 : f32 to vector<16x1xf32>
    %35 = arith.divf %33, %34 : vector<16x1xf32>
    %36 = vector.broadcast %35 : vector<16x1xf32> to vector<16x64xf32>
    %37 = arith.subf %31, %36 : vector<16x64xf32>
    %38 = arith.mulf %37, %37 : vector<16x64xf32>
    %cst_35 = arith.constant dense<0.000000e+00> : vector<16xf32>
    %39 = vector.multi_reduction <add>, %38, %cst_35 [1] : vector<16x64xf32> to vector<16xf32>
    %40 = vector.shape_cast %39 : vector<16xf32> to vector<16x1xf32>
    %cst_36 = arith.constant 6.400000e+01 : f32
    %41 = vector.broadcast %cst_36 : f32 to vector<16x1xf32>
    %42 = arith.divf %40, %41 : vector<16x1xf32>
    %43 = vector.broadcast %35 : vector<16x1xf32> to vector<16x64xf32>
    %44 = arith.subf %31, %43 : vector<16x64xf32>
    %cst_37 = arith.constant 9.99999996E-13 : f32
    %45 = vector.broadcast %cst_37 : f32 to vector<16x1xf32>
    %46 = arith.addf %42, %45 : vector<16x1xf32>
    %47 = math.rsqrt %46 : vector<16x1xf32>
    %48 = vector.broadcast %47 : vector<16x1xf32> to vector<16x64xf32>
    %49 = arith.mulf %44, %48 : vector<16x64xf32>
    %50 = vector.broadcast %23 : vector<1x64xf32> to vector<16x64xf32>
    %51 = arith.mulf %49, %50 : vector<16x64xf32>
    %52 = vector.broadcast %24 : vector<1x64xf32> to vector<16x64xf32>
    %53 = arith.addf %51, %52 : vector<16x64xf32>
    %cst_38 = arith.constant dense<0.000000e+00> : vector<16x1xf32>
    %54 = tpu.matmul %53, %25, %cst_38 {dimension_numbers = #tpu.dot_dimension_numbers<[1], [0], [0], [1], [0, 0, 1, 1], [], []>} : vector<16x64xf32>, vector<64x1xf32>, vector<16x1xf32> -> vector<16x1xf32>
    %55 = vector.broadcast %26 : vector<1x1xf32> to vector<16x1xf32>
    %56 = arith.addf %54, %55 : vector<16x1xf32>
    %cst_39 = arith.constant 0xFF800000 : f32
    %57 = vector.broadcast %cst_39 : f32 to vector<16x1xf32>
    %58 = arith.select %20, %56, %57 : vector<16x1xi1>, vector<16x1xf32>
    %c0_40 = arith.constant 0 : index
    %c0_41 = arith.constant 0 : index
    %59 = vector.load %arg16[%c0_40, %c0_41] : memref<128x64xf32, #tpu.memory_space<vmem>>, vector<128x64xf32>
    %c0_42 = arith.constant 0 : index
    %c0_43 = arith.constant 0 : index
    %60 = vector.load %arg17[%c0_42, %c0_43] : memref<1x64xf32, #tpu.memory_space<vmem>>, vector<1x64xf32>
    %c0_44 = arith.constant 0 : index
    %c0_45 = arith.constant 0 : index
    %61 = vector.load %arg18[%c0_44, %c0_45] : memref<1x64xf32, #tpu.memory_space<vmem>>, vector<1x64xf32>
    %c0_46 = arith.constant 0 : index
    %c0_47 = arith.constant 0 : index
    %62 = vector.load %arg19[%c0_46, %c0_47] : memref<1x64xf32, #tpu.memory_space<vmem>>, vector<1x64xf32>
    %c0_48 = arith.constant 0 : index
    %c0_49 = arith.constant 0 : index
    %63 = vector.load %arg20[%c0_48, %c0_49] : memref<64x10xf32, #tpu.memory_space<vmem>>, vector<64x10xf32>
    %c0_50 = arith.constant 0 : index
    %c0_51 = arith.constant 0 : index
    %64 = vector.load %arg21[%c0_50, %c0_51] : memref<1x10xf32, #tpu.memory_space<vmem>>, vector<1x10xf32>
    %cst_52 = arith.constant dense<0.000000e+00> : vector<16x64xf32>
    %65 = tpu.matmul %17, %59, %cst_52 {dimension_numbers = #tpu.dot_dimension_numbers<[1], [0], [0], [1], [0, 0, 1, 1], [], []>} : vector<16x128xf32>, vector<128x64xf32>, vector<16x64xf32> -> vector<16x64xf32>
    %66 = vector.broadcast %60 : vector<1x64xf32> to vector<16x64xf32>
    %67 = arith.addf %65, %66 : vector<16x64xf32>
    %cst_53 = arith.constant 0.000000e+00 : f32
    %68 = vector.broadcast %cst_53 : f32 to vector<16x64xf32>
    %69 = arith.maximumf %67, %68 : vector<16x64xf32>
    %cst_54 = arith.constant dense<0.000000e+00> : vector<16xf32>
    %70 = vector.multi_reduction <add>, %69, %cst_54 [1] : vector<16x64xf32> to vector<16xf32>
    %71 = vector.shape_cast %70 : vector<16xf32> to vector<16x1xf32>
    %cst_55 = arith.constant 6.400000e+01 : f32
    %72 = vector.broadcast %cst_55 : f32 to vector<16x1xf32>
    %73 = arith.divf %71, %72 : vector<16x1xf32>
    %74 = vector.broadcast %73 : vector<16x1xf32> to vector<16x64xf32>
    %75 = arith.subf %69, %74 : vector<16x64xf32>
    %76 = arith.mulf %75, %75 : vector<16x64xf32>
    %cst_56 = arith.constant dense<0.000000e+00> : vector<16xf32>
    %77 = vector.multi_reduction <add>, %76, %cst_56 [1] : vector<16x64xf32> to vector<16xf32>
    %78 = vector.shape_cast %77 : vector<16xf32> to vector<16x1xf32>
    %cst_57 = arith.constant 6.400000e+01 : f32
    %79 = vector.broadcast %cst_57 : f32 to vector<16x1xf32>
    %80 = arith.divf %78, %79 : vector<16x1xf32>
    %81 = vector.broadcast %73 : vector<16x1xf32> to vector<16x64xf32>
    %82 = arith.subf %69, %81 : vector<16x64xf32>
    %cst_58 = arith.constant 9.99999996E-13 : f32
    %83 = vector.broadcast %cst_58 : f32 to vector<16x1xf32>
    %84 = arith.addf %80, %83 : vector<16x1xf32>
    %85 = math.rsqrt %84 : vector<16x1xf32>
    %86 = vector.broadcast %85 : vector<16x1xf32> to vector<16x64xf32>
    %87 = arith.mulf %82, %86 : vector<16x64xf32>
    %88 = vector.broadcast %61 : vector<1x64xf32> to vector<16x64xf32>
    %89 = arith.mulf %87, %88 : vector<16x64xf32>
    %90 = vector.broadcast %62 : vector<1x64xf32> to vector<16x64xf32>
    %91 = arith.addf %89, %90 : vector<16x64xf32>
    %cst_59 = arith.constant dense<0.000000e+00> : vector<16x10xf32>
    %92 = tpu.matmul %91, %63, %cst_59 {dimension_numbers = #tpu.dot_dimension_numbers<[1], [0], [0], [1], [0, 0, 1, 1], [], []>} : vector<16x64xf32>, vector<64x10xf32>, vector<16x10xf32> -> vector<16x10xf32>
    %93 = vector.broadcast %64 : vector<1x10xf32> to vector<16x10xf32>
    %94 = arith.addf %92, %93 : vector<16x10xf32>
    %c0_60 = arith.constant 0 : index
    %c0_61 = arith.constant 0 : index
    %95 = vector.load %arg22[%c0_60, %c0_61] : memref<128x64xf32, #tpu.memory_space<vmem>>, vector<128x64xf32>
    %c0_62 = arith.constant 0 : index
    %c0_63 = arith.constant 0 : index
    %96 = vector.load %arg23[%c0_62, %c0_63] : memref<1x64xf32, #tpu.memory_space<vmem>>, vector<1x64xf32>
    %c0_64 = arith.constant 0 : index
    %c0_65 = arith.constant 0 : index
    %97 = vector.load %arg24[%c0_64, %c0_65] : memref<1x64xf32, #tpu.memory_space<vmem>>, vector<1x64xf32>
    %c0_66 = arith.constant 0 : index
    %c0_67 = arith.constant 0 : index
    %98 = vector.load %arg25[%c0_66, %c0_67] : memref<1x64xf32, #tpu.memory_space<vmem>>, vector<1x64xf32>
    %c0_68 = arith.constant 0 : index
    %c0_69 = arith.constant 0 : index
    %99 = vector.load %arg26[%c0_68, %c0_69] : memref<64x6xf32, #tpu.memory_space<vmem>>, vector<64x6xf32>
    %c0_70 = arith.constant 0 : index
    %c0_71 = arith.constant 0 : index
    %100 = vector.load %arg27[%c0_70, %c0_71] : memref<1x6xf32, #tpu.memory_space<vmem>>, vector<1x6xf32>
    %cst_72 = arith.constant dense<0.000000e+00> : vector<16x64xf32>
    %101 = tpu.matmul %17, %95, %cst_72 {dimension_numbers = #tpu.dot_dimension_numbers<[1], [0], [0], [1], [0, 0, 1, 1], [], []>} : vector<16x128xf32>, vector<128x64xf32>, vector<16x64xf32> -> vector<16x64xf32>
    %102 = vector.broadcast %96 : vector<1x64xf32> to vector<16x64xf32>
    %103 = arith.addf %101, %102 : vector<16x64xf32>
    %cst_73 = arith.constant 0.000000e+00 : f32
    %104 = vector.broadcast %cst_73 : f32 to vector<16x64xf32>
    %105 = arith.maximumf %103, %104 : vector<16x64xf32>
    %cst_74 = arith.constant dense<0.000000e+00> : vector<16xf32>
    %106 = vector.multi_reduction <add>, %105, %cst_74 [1] : vector<16x64xf32> to vector<16xf32>
    %107 = vector.shape_cast %106 : vector<16xf32> to vector<16x1xf32>
    %cst_75 = arith.constant 6.400000e+01 : f32
    %108 = vector.broadcast %cst_75 : f32 to vector<16x1xf32>
    %109 = arith.divf %107, %108 : vector<16x1xf32>
    %110 = vector.broadcast %109 : vector<16x1xf32> to vector<16x64xf32>
    %111 = arith.subf %105, %110 : vector<16x64xf32>
    %112 = arith.mulf %111, %111 : vector<16x64xf32>
    %cst_76 = arith.constant dense<0.000000e+00> : vector<16xf32>
    %113 = vector.multi_reduction <add>, %112, %cst_76 [1] : vector<16x64xf32> to vector<16xf32>
    %114 = vector.shape_cast %113 : vector<16xf32> to vector<16x1xf32>
    %cst_77 = arith.constant 6.400000e+01 : f32
    %115 = vector.broadcast %cst_77 : f32 to vector<16x1xf32>
    %116 = arith.divf %114, %115 : vector<16x1xf32>
    %117 = vector.broadcast %109 : vector<16x1xf32> to vector<16x64xf32>
    %118 = arith.subf %105, %117 : vector<16x64xf32>
    %cst_78 = arith.constant 9.99999996E-13 : f32
    %119 = vector.broadcast %cst_78 : f32 to vector<16x1xf32>
    %120 = arith.addf %116, %119 : vector<16x1xf32>
    %121 = math.rsqrt %120 : vector<16x1xf32>
    %122 = vector.broadcast %121 : vector<16x1xf32> to vector<16x64xf32>
    %123 = arith.mulf %118, %122 : vector<16x64xf32>
    %124 = vector.broadcast %97 : vector<1x64xf32> to vector<16x64xf32>
    %125 = arith.mulf %123, %124 : vector<16x64xf32>
    %126 = vector.broadcast %98 : vector<1x64xf32> to vector<16x64xf32>
    %127 = arith.addf %125, %126 : vector<16x64xf32>
    %cst_79 = arith.constant dense<0.000000e+00> : vector<16x6xf32>
    %128 = tpu.matmul %127, %99, %cst_79 {dimension_numbers = #tpu.dot_dimension_numbers<[1], [0], [0], [1], [0, 0, 1, 1], [], []>} : vector<16x64xf32>, vector<64x6xf32>, vector<16x6xf32> -> vector<16x6xf32>
    %129 = vector.broadcast %100 : vector<1x6xf32> to vector<16x6xf32>
    %130 = arith.addf %128, %129 : vector<16x6xf32>
    %c0_80 = arith.constant 0 : index
    %c0_81 = arith.constant 0 : index
    %131 = vector.load %arg28[%c0_80, %c0_81] : memref<128x64xf32, #tpu.memory_space<vmem>>, vector<128x64xf32>
    %c0_82 = arith.constant 0 : index
    %c0_83 = arith.constant 0 : index
    %132 = vector.load %arg29[%c0_82, %c0_83] : memref<1x64xf32, #tpu.memory_space<vmem>>, vector<1x64xf32>
    %c0_84 = arith.constant 0 : index
    %c0_85 = arith.constant 0 : index
    %133 = vector.load %arg30[%c0_84, %c0_85] : memref<1x64xf32, #tpu.memory_space<vmem>>, vector<1x64xf32>
    %c0_86 = arith.constant 0 : index
    %c0_87 = arith.constant 0 : index
    %134 = vector.load %arg31[%c0_86, %c0_87] : memref<1x64xf32, #tpu.memory_space<vmem>>, vector<1x64xf32>
    %c0_88 = arith.constant 0 : index
    %c0_89 = arith.constant 0 : index
    %135 = vector.load %arg32[%c0_88, %c0_89] : memref<64x10xf32, #tpu.memory_space<vmem>>, vector<64x10xf32>
    %c0_90 = arith.constant 0 : index
    %c0_91 = arith.constant 0 : index
    %136 = vector.load %arg33[%c0_90, %c0_91] : memref<1x10xf32, #tpu.memory_space<vmem>>, vector<1x10xf32>
    %cst_92 = arith.constant dense<0.000000e+00> : vector<16x64xf32>
    %137 = tpu.matmul %5, %131, %cst_92 {dimension_numbers = #tpu.dot_dimension_numbers<[1], [0], [0], [1], [0, 0, 1, 1], [], []>} : vector<16x128xf32>, vector<128x64xf32>, vector<16x64xf32> -> vector<16x64xf32>
    %138 = vector.broadcast %132 : vector<1x64xf32> to vector<16x64xf32>
    %139 = arith.addf %137, %138 : vector<16x64xf32>
    %cst_93 = arith.constant 0.000000e+00 : f32
    %140 = vector.broadcast %cst_93 : f32 to vector<16x64xf32>
    %141 = arith.maximumf %139, %140 : vector<16x64xf32>
    %cst_94 = arith.constant dense<0.000000e+00> : vector<16xf32>
    %142 = vector.multi_reduction <add>, %141, %cst_94 [1] : vector<16x64xf32> to vector<16xf32>
    %143 = vector.shape_cast %142 : vector<16xf32> to vector<16x1xf32>
    %cst_95 = arith.constant 6.400000e+01 : f32
    %144 = vector.broadcast %cst_95 : f32 to vector<16x1xf32>
    %145 = arith.divf %143, %144 : vector<16x1xf32>
    %146 = vector.broadcast %145 : vector<16x1xf32> to vector<16x64xf32>
    %147 = arith.subf %141, %146 : vector<16x64xf32>
    %148 = arith.mulf %147, %147 : vector<16x64xf32>
    %cst_96 = arith.constant dense<0.000000e+00> : vector<16xf32>
    %149 = vector.multi_reduction <add>, %148, %cst_96 [1] : vector<16x64xf32> to vector<16xf32>
    %150 = vector.shape_cast %149 : vector<16xf32> to vector<16x1xf32>
    %cst_97 = arith.constant 6.400000e+01 : f32
    %151 = vector.broadcast %cst_97 : f32 to vector<16x1xf32>
    %152 = arith.divf %150, %151 : vector<16x1xf32>
    %153 = vector.broadcast %145 : vector<16x1xf32> to vector<16x64xf32>
    %154 = arith.subf %141, %153 : vector<16x64xf32>
    %cst_98 = arith.constant 9.99999996E-13 : f32
    %155 = vector.broadcast %cst_98 : f32 to vector<16x1xf32>
    %156 = arith.addf %152, %155 : vector<16x1xf32>
    %157 = math.rsqrt %156 : vector<16x1xf32>
    %158 = vector.broadcast %157 : vector<16x1xf32> to vector<16x64xf32>
    %159 = arith.mulf %154, %158 : vector<16x64xf32>
    %160 = vector.broadcast %133 : vector<1x64xf32> to vector<16x64xf32>
    %161 = arith.mulf %159, %160 : vector<16x64xf32>
    %162 = vector.broadcast %134 : vector<1x64xf32> to vector<16x64xf32>
    %163 = arith.addf %161, %162 : vector<16x64xf32>
    %cst_99 = arith.constant dense<0.000000e+00> : vector<16x10xf32>
    %164 = tpu.matmul %163, %135, %cst_99 {dimension_numbers = #tpu.dot_dimension_numbers<[1], [0], [0], [1], [0, 0, 1, 1], [], []>} : vector<16x64xf32>, vector<64x10xf32>, vector<16x10xf32> -> vector<16x10xf32>
    %165 = vector.broadcast %136 : vector<1x10xf32> to vector<16x10xf32>
    %166 = arith.addf %164, %165 : vector<16x10xf32>
    %cst_100 = arith.constant 0.000000e+00 : f32
    %167 = vector.broadcast %cst_100 : f32 to vector<16x101xf32>
    %168 = tpu.concatenate %58, %94, %130, %166, %167 in 1 : vector<16x1xf32>, vector<16x10xf32>, vector<16x6xf32>, vector<16x10xf32>, vector<16x101xf32> -> vector<16x128xf32>
    %c0_101 = arith.constant 0 : index
    %c0_102 = arith.constant 0 : index
    %169 = vector.load %arg34[%c0_101, %c0_102] : memref<16x128xf32, #tpu.memory_space<vmem>>, vector<16x128xf32>
    tpu.vector_store %arg34[%c0_101, %c0_102], %168 {strides = array<i32>} : memref<16x128xf32, #tpu.memory_space<vmem>>, vector<16x128xf32>,
    return
  }
  func.func @transform_0(%arg0: i32) -> (i32, i32) {
    %c0_i32 = arith.constant 0 : i32
    %c0_i32_0 = arith.constant 0 : i32
    return %arg0, %c0_i32 : i32, i32
  }
  func.func @transform_1(%arg0: i32) -> (i32, i32) {
    %c0_i32 = arith.constant 0 : i32
    %c0_i32_0 = arith.constant 0 : i32
    return %arg0, %c0_i32 : i32, i32
  }
  func.func @transform_2(%arg0: i32) -> (i32, i32) {
    %c0_i32 = arith.constant 0 : i32
    %c0_i32_0 = arith.constant 0 : i32
    return %arg0, %c0_i32 : i32, i32
  }
  func.func @transform_3(%arg0: i32) -> (i32, i32) {
    %c0_i32 = arith.constant 0 : i32
    %c0_i32_0 = arith.constant 0 : i32
    %c0_i32_1 = arith.constant 0 : i32
    return %c0_i32, %c0_i32_0 : i32, i32
  }
  func.func @transform_4(%arg0: i32) -> (i32, i32) {
    %c0_i32 = arith.constant 0 : i32
    %c0_i32_0 = arith.constant 0 : i32
    %c0_i32_1 = arith.constant 0 : i32
    return %c0_i32, %c0_i32_0 : i32, i32
  }
  func.func @transform_5(%arg0: i32) -> (i32, i32) {
    %c0_i32 = arith.constant 0 : i32
    %c0_i32_0 = arith.constant 0 : i32
    %c0_i32_1 = arith.constant 0 : i32
    return %c0_i32, %c0_i32_0 : i32, i32
  }
  func.func @transform_6(%arg0: i32) -> (i32, i32) {
    %c0_i32 = arith.constant 0 : i32
    %c0_i32_0 = arith.constant 0 : i32
    %c0_i32_1 = arith.constant 0 : i32
    return %c0_i32, %c0_i32_0 : i32, i32
  }
  func.func @transform_7(%arg0: i32) -> (i32, i32) {
    %c0_i32 = arith.constant 0 : i32
    %c0_i32_0 = arith.constant 0 : i32
    %c0_i32_1 = arith.constant 0 : i32
    return %c0_i32, %c0_i32_0 : i32, i32
  }
  func.func @transform_8(%arg0: i32) -> (i32, i32) {
    %c0_i32 = arith.constant 0 : i32
    %c0_i32_0 = arith.constant 0 : i32
    %c0_i32_1 = arith.constant 0 : i32
    return %c0_i32, %c0_i32_0 : i32, i32
  }
  func.func @transform_9(%arg0: i32) -> (i32, i32) {
    %c0_i32 = arith.constant 0 : i32
    %c0_i32_0 = arith.constant 0 : i32
    %c0_i32_1 = arith.constant 0 : i32
    return %c0_i32, %c0_i32_0 : i32, i32
  }
  func.func @transform_10(%arg0: i32) -> (i32, i32) {
    %c0_i32 = arith.constant 0 : i32
    %c0_i32_0 = arith.constant 0 : i32
    %c0_i32_1 = arith.constant 0 : i32
    return %c0_i32, %c0_i32_0 : i32, i32
  }
  func.func @transform_11(%arg0: i32) -> (i32, i32) {
    %c0_i32 = arith.constant 0 : i32
    %c0_i32_0 = arith.constant 0 : i32
    %c0_i32_1 = arith.constant 0 : i32
    return %c0_i32, %c0_i32_0 : i32, i32
  }
  func.func @transform_12(%arg0: i32) -> (i32, i32) {
    %c0_i32 = arith.constant 0 : i32
    %c0_i32_0 = arith.constant 0 : i32
    %c0_i32_1 = arith.constant 0 : i32
    return %c0_i32, %c0_i32_0 : i32, i32
  }
  func.func @transform_13(%arg0: i32) -> (i32, i32) {
    %c0_i32 = arith.constant 0 : i32
    %c0_i32_0 = arith.constant 0 : i32
    %c0_i32_1 = arith.constant 0 : i32
    return %c0_i32, %c0_i32_0 : i32, i32
  }
  func.func @transform_14(%arg0: i32) -> (i32, i32) {
    %c0_i32 = arith.constant 0 : i32
    %c0_i32_0 = arith.constant 0 : i32
    %c0_i32_1 = arith.constant 0 : i32
    return %c0_i32, %c0_i32_0 : i32, i32
  }
  func.func @transform_15(%arg0: i32) -> (i32, i32) {
    %c0_i32 = arith.constant 0 : i32
    %c0_i32_0 = arith.constant 0 : i32
    %c0_i32_1 = arith.constant 0 : i32
    return %c0_i32, %c0_i32_0 : i32, i32
  }
  func.func @transform_16(%arg0: i32) -> (i32, i32) {
    %c0_i32 = arith.constant 0 : i32
    %c0_i32_0 = arith.constant 0 : i32
    %c0_i32_1 = arith.constant 0 : i32
    return %c0_i32, %c0_i32_0 : i32, i32
  }
  func.func @transform_17(%arg0: i32) -> (i32, i32) {
    %c0_i32 = arith.constant 0 : i32
    %c0_i32_0 = arith.constant 0 : i32
    %c0_i32_1 = arith.constant 0 : i32
    return %c0_i32, %c0_i32_0 : i32, i32
  }
  func.func @transform_18(%arg0: i32) -> (i32, i32) {
    %c0_i32 = arith.constant 0 : i32
    %c0_i32_0 = arith.constant 0 : i32
    %c0_i32_1 = arith.constant 0 : i32
    return %c0_i32, %c0_i32_0 : i32, i32
  }
  func.func @transform_19(%arg0: i32) -> (i32, i32) {
    %c0_i32 = arith.constant 0 : i32
    %c0_i32_0 = arith.constant 0 : i32
    %c0_i32_1 = arith.constant 0 : i32
    return %c0_i32, %c0_i32_0 : i32, i32
  }
  func.func @transform_20(%arg0: i32) -> (i32, i32) {
    %c0_i32 = arith.constant 0 : i32
    %c0_i32_0 = arith.constant 0 : i32
    %c0_i32_1 = arith.constant 0 : i32
    return %c0_i32, %c0_i32_0 : i32, i32
  }
  func.func @transform_21(%arg0: i32) -> (i32, i32) {
    %c0_i32 = arith.constant 0 : i32
    %c0_i32_0 = arith.constant 0 : i32
    %c0_i32_1 = arith.constant 0 : i32
    return %c0_i32, %c0_i32_0 : i32, i32
  }
  func.func @transform_22(%arg0: i32) -> (i32, i32) {
    %c0_i32 = arith.constant 0 : i32
    %c0_i32_0 = arith.constant 0 : i32
    %c0_i32_1 = arith.constant 0 : i32
    return %c0_i32, %c0_i32_0 : i32, i32
  }
  func.func @transform_23(%arg0: i32) -> (i32, i32) {
    %c0_i32 = arith.constant 0 : i32
    %c0_i32_0 = arith.constant 0 : i32
    %c0_i32_1 = arith.constant 0 : i32
    return %c0_i32, %c0_i32_0 : i32, i32
  }
  func.func @transform_24(%arg0: i32) -> (i32, i32) {
    %c0_i32 = arith.constant 0 : i32
    %c0_i32_0 = arith.constant 0 : i32
    %c0_i32_1 = arith.constant 0 : i32
    return %c0_i32, %c0_i32_0 : i32, i32
  }
  func.func @transform_25(%arg0: i32) -> (i32, i32) {
    %c0_i32 = arith.constant 0 : i32
    %c0_i32_0 = arith.constant 0 : i32
    %c0_i32_1 = arith.constant 0 : i32
    return %c0_i32, %c0_i32_0 : i32, i32
  }
  func.func @transform_26(%arg0: i32) -> (i32, i32) {
    %c0_i32 = arith.constant 0 : i32
    %c0_i32_0 = arith.constant 0 : i32
    %c0_i32_1 = arith.constant 0 : i32
    return %c0_i32, %c0_i32_0 : i32, i32
  }
  func.func @transform_27(%arg0: i32) -> (i32, i32) {
    %c0_i32 = arith.constant 0 : i32
    %c0_i32_0 = arith.constant 0 : i32
    %c0_i32_1 = arith.constant 0 : i32
    return %c0_i32, %c0_i32_0 : i32, i32
  }
  func.func @transform_28(%arg0: i32) -> (i32, i32) {
    %c0_i32 = arith.constant 0 : i32
    %c0_i32_0 = arith.constant 0 : i32
    %c0_i32_1 = arith.constant 0 : i32
    return %c0_i32, %c0_i32_0 : i32, i32
  }
  func.func @transform_29(%arg0: i32) -> (i32, i32) {
    %c0_i32 = arith.constant 0 : i32
    %c0_i32_0 = arith.constant 0 : i32
    %c0_i32_1 = arith.constant 0 : i32
    return %c0_i32, %c0_i32_0 : i32, i32
  }
  func.func @transform_30(%arg0: i32) -> (i32, i32) {
    %c0_i32 = arith.constant 0 : i32
    %c0_i32_0 = arith.constant 0 : i32
    %c0_i32_1 = arith.constant 0 : i32
    return %c0_i32, %c0_i32_0 : i32, i32
  }
  func.func @transform_31(%arg0: i32) -> (i32, i32) {
    %c0_i32 = arith.constant 0 : i32
    %c0_i32_0 = arith.constant 0 : i32
    %c0_i32_1 = arith.constant 0 : i32
    return %c0_i32, %c0_i32_0 : i32, i32
  }
  func.func @transform_32(%arg0: i32) -> (i32, i32) {
    %c0_i32 = arith.constant 0 : i32
    %c0_i32_0 = arith.constant 0 : i32
    %c0_i32_1 = arith.constant 0 : i32
    return %c0_i32, %c0_i32_0 : i32, i32
  }
  func.func @transform_33(%arg0: i32) -> (i32, i32) {
    %c0_i32 = arith.constant 0 : i32
    %c0_i32_0 = arith.constant 0 : i32
    return %arg0, %c0_i32 : i32, i32
  }
}

</mosaic_0001>

<bundles_post_ra>
// kernel: tpu_custom_call.1
= control target key start
LH: loop header
LB: loop body
LE: loop exit
PB: predicated region body
PF: predicated region fallthrough
CT: control target
= control target key end

     0   :  { %s2236_s6 = smov 1   ;;  %s2237_s10 = smov 2   ;;  %s2661_s0 = inlined_call_operand.smem [shape: u32[34], index: -1, kind: input, shape index: {}] }
   0x1   :  { %s2283_s5 = sld [smem:[%s2661_s0]]   ;;  %s2238_s14 = smov 3  }
   0x2   :  { %s2288_s9 = sld [smem:[%s2661_s0 + %s2236_s6]]   ;;  %s2239_s18 = smov 4  }
   0x3   :  { %s2293_s13 = sld [smem:[%s2661_s0 + %s2237_s10]]   ;;  %s2240_s22 = smov 5  }
   0x4   :  { %s2298_s17 = sld [smem:[%s2661_s0 + %s2238_s14]]   ;;  %s2241_s26 = smov 6  }
   0x5   :  { %s2303_s21 = sld [smem:[%s2661_s0 + %s2239_s18]]   ;;  %s2242_s30 = smov 7  }
   0x6   :  { %s2308_s25 = sld [smem:[%s2661_s0 + %s2240_s22]]   ;;  %s2243_s4 = smov 8  }
   0x7   :  { %s2313_s29 = sld [smem:[%s2661_s0 + %s2241_s26]]   ;;  %s2244_s10 = smov 9  }
   0x8   :  { %s2318_s3 = sld [smem:[%s2661_s0 + %s2242_s30]]   ;;  %s2245_s15 = smov 10  }
   0x9   :  { %2666 = sst [smem:[#allocation6_spill]] %s2293_s13  ;;  %s2246_s20 = smov 11  }
   0xa   :  { %s2323_s8 = sld [smem:[%s2661_s0 + %s2243_s4]]   ;;  %s2247_s26 = smov 12  }
   0xb   :  { %s2328_s14 = sld [smem:[%s2661_s0 + %s2244_s10]]   ;;  %s2248_s1 = smov 13  }
   0xc   :  { %s2333_s19 = sld [smem:[%s2661_s0 + %s2245_s15]]   ;;  %s2249_s7 = smov 14  }
   0xd   :  { %s2338_s24 = sld [smem:[%s2661_s0 + %s2246_s20]]   ;;  %s2250_s15 = smov 15  }
   0xe   :  { %s2343_s30 = sld [smem:[%s2661_s0 + %s2247_s26]]   ;;  %s2251_s22 = smov 16  }
   0xf   :  { %s2348_s6 = sld [smem:[%s2661_s0 + %s2248_s1]]   ;;  %s2252_s28 = smov 17  }
  0x10   :  { %s1467_s12 = sld [smem:[%s2661_s0 + %s2249_s7]]   ;;  %s2253_s10 = smov 18  }
  0x11   :  { %s2356_s20 = sld [smem:[%s2661_s0 + %s2250_s15]]   ;;  %s2254_s15 = smov 19  }
  0x12   :  { %s2361_s27 = sld [smem:[%s2661_s0 + %s2251_s22]]   ;;  %s2255_s22 = smov 20  }
  0x13   :  { %2667 = sst [smem:[#allocation7_spill]] %s2338_s24  ;;  %s2258_s16 = smov 23  }
  0x14   :  { %2668 = sst [smem:[#allocation8_spill]] %s2343_s30 }
  0x15   :  { %s2366_s4 = sld [smem:[%s2661_s0 + %s2252_s28]]   ;;  %s2256_s28 = smov 21  }
  0x16   :  { %s2371_s13 = sld [smem:[%s2661_s0 + %s2253_s10]]   ;;  %v72_v0 = vstv %s1467_s12  ;;  %s2257_s10 = smov 22  }
  0x17   :  { %s2376_s30 = sld [smem:[%s2661_s0 + %s2254_s15]]   ;;  %73 = vst [vmem:[#allocation2] sm:$0x1] %v72_v0  ;;  %s2259_s12 = smov 24  }
  0x18   :  { %s2381_s24 = sld [smem:[%s2661_s0 + %s2255_s22]]  }
  0x19   :  { %s2386_s7 = sld [smem:[%s2661_s0 + %s2256_s28]]   ;;  %s2260_s28 = smov 25  }
  0x1a   :  { %s2391_s15 = sld [smem:[%s2661_s0 + %s2257_s10]]  }
  0x1b   :  { %2669 = sst [smem:[#allocation9_spill]] %s2366_s4  ;;  %s2262_s4 = smov 27  }
  0x1c   :  { %2670 = sst [smem:[#allocation10_spill]] %s2371_s13  ;;  %s2261_s13 = smov 26  }
  0x1d   :  { %s2396_s22 = sld [smem:[%s2661_s0 + %s2258_s16]]  }
  0x1e   :  { %2671 = sst [smem:[#allocation11_spill]] %s2381_s24  ;;  %s2264_s24 = smov 29  }
  0x1f   :  { %2672 = sst [smem:[#allocation12_spill]] %s2386_s7 }
  0x20   :  { %2673 = sst [smem:[#allocation13_spill]] %s2391_s15 }
  0x21   :  { %s2401_s1 = sld [smem:[%s2661_s0 + %s2259_s12]]   ;;  %s2263_s12 = smov 28  }
  0x22   :  { %s2406_s7 = sld [smem:[%s2661_s0 + %s2260_s28]]  }
  0x23   :  { %2674 = sst [smem:[#allocation14_spill]] %s2396_s22 }
  0x24   :  { %s2411_s15 = sld [smem:[%s2661_s0 + %s2261_s13]]   ;;  %s2265_s13 = smov 30  }
  0x25   :  { %s2416_s22 = sld [smem:[%s2661_s0 + %s2262_s4]]   ;;  %s2266_s4 = smov 31  }
  0x27   :  { %2675 = sst [smem:[#allocation15_spill]] %s2401_s1 }
  0x28   :  { %2676 = sst [smem:[#allocation16_spill]] %s2406_s7 }
  0x29   :  { %s2421_s1 = sld [smem:[%s2661_s0 + %s2263_s12]]   ;;  %s2267_s12 = smov 32  }
  0x2a   :  { %2677 = sst [smem:[#allocation17_spill]] %s2411_s15 }
  0x2b   :  { %2678 = sst [smem:[#allocation18_spill]] %s2416_s22 }
  0x2c   :  { %s2426_s7 = sld [smem:[%s2661_s0 + %s2264_s24]]   ;;  %s2268_s24 = smov 33  }
  0x2d   :  { %s2431_s15 = sld [smem:[%s2661_s0 + %s2265_s13]]  }
  0x2e   :  { %s2436_s22 = sld [smem:[%s2661_s0 + %s2266_s4]]  }
  0x2f   :  { %2679 = sst [smem:[#allocation19_spill]] %s2421_s1 }
  0x30   :  { %s2441_s1 = sld [smem:[%s2661_s0 + %s2267_s12]]  }
  0x32   :  { %2680 = sst [smem:[#allocation20_spill]] %s2426_s7 }
  0x33   :  { %s2446_s7 = sld [smem:[%s2661_s0 + %s2268_s24]]  }
  0x34   :  { %v143_v1 = vld [vmem:[%s2298_s17] sm:$0xff]  ;;  %v144_v2 = vld [vmem:[%s2298_s17 + $0x8] sm:$0xff]  ;;  %v145_v3 = vld [vmem:[%s2298_s17 + $0x10] sm:$0xff]  ;;  %vm253_vm0 = vcmask 1045504   ;;  %vm246_vm1 = vcmask 48128   ;;  %vm154_vm2 = vcmask 261120  }
  0x35   :  { %v1925_v4 = vpack.c.bf16 %v144_v2, %v143_v1  ;;  %v146_v5 = vld [vmem:[%s2298_s17 + $0x18] sm:$0xff]  ;;  %v238_v6 = vld [vmem:[%s2308_s25] sm:$0x3f]  ;;  %v237_v10 = vld [vmem:[%s2288_s9 + $0x8] sm:$0xff] }
  0x36   :  { %v236_v7 = vld [vmem:[%s2288_s9] sm:$0xff]  ;;  %v1929_v8 = vpack.c.bf16 %v146_v5, %v145_v3  ;;  %1669 = vmatprep.subr.msk.mxu1 %vm253_vm0, %v238_v6  ;;  %v335_v12 = vld [vmem:[%s2318_s3 + $0x8] sm:$0xff]  ;;  %v336_v13 = vld [vmem:[%s2318_s3 + $0x10] sm:$0xff] }
  0x37   :  { %1671 = vmatprep.mubr.msk.f32.mxu1 %vm246_vm1, %v236_v7  ;;  %v141_v9 = vld [vmem:[%s2283_s5] sm:$0xff]  ;;  %1926 = vmatprep.subr.bf16.mxu0 %v1925_v4  ;;  %v337_v15 = vld [vmem:[%s2318_s3 + $0x18] sm:$0xff]  ;;  %v339_v18 = vld [vmem:[%s2318_s3 + $0x28] sm:$0xff] }
  0x38   :  { %1670 = vmatpush3.msk.msra.mxu1 %vm253_vm0, %v238_v6  ;;  %v334_v11 = vld [vmem:[%s2318_s3] sm:$0xff]  ;;  %1928 = vmatpush3.bf16.msra.mxu0 %v1925_v4  ;;  %v1937_v16 = vpack.c.bf16 %v337_v15, %v336_v13 }
  0x39   :  { %1666 = vmatprep.mubr.msk.f32.mxu0 %vm154_vm2, %v141_v9  ;;  %v1933_v14 = vpack.c.bf16 %v335_v12, %v334_v11  ;;  %1930 = vmatprep.subr.bf16.mxu0 %v1929_v8  ;;  %v338_v17 = vld [vmem:[%s2318_s3 + $0x20] sm:$0xff] }
  0x3a   :  { %1672 = vmatmul.mubr.msk.f32.vlgmr.msra.gmra.mrb[0].mxu1 %vm246_vm1, %v237_v10 }
  0x3b   :  { %1934 = vmatprep.subr.bf16.mxu1 %v1933_v14 }
  0x3c   :  { %1936 = vmatpush3.bf16.msra.mxu1 %v1933_v14 }
  0x3d   :  { %74 = vsyncpa [#allocation4], 0  ;;  %1932 = vmatpush3.bf16.msra.mxu0 %v1929_v8  ;;  %v142_v19 = vld [vmem:[%s2283_s5 + $0x8] sm:$0xff]  ;;  %1938 = vmatprep.subr.bf16.mxu1 %v1937_v16  ;;  %v1941_v20 = vpack.c.bf16 %v339_v18, %v338_v17  ;;  %v340_v21 = vld [vmem:[%s2318_s3 + $0x30] sm:$0xff]  ;;  %vm547_vm3 = vcmask 523264   ;;  %s2681_s0 = sld [smem:[#allocation7_spill]] }
  0x3e   :  { %v341_v22 = vld [vmem:[%s2318_s3 + $0x38] sm:$0xff]  ;;  %v342_v24 = vld [vmem:[%s2318_s3 + $0x40] sm:$0xff]  ;;  %v343_v25 = vld [vmem:[%s2318_s3 + $0x48] sm:$0xff]  ;;  %s2682_s5 = sld [smem:[#allocation8_spill]]  ;;  %s2683_s9 = sld [smem:[#allocation12_spill]]  ;;  %vm1424_vm6 = vcmask 7168  }
  0x3f   :  { %v1945_v23 = vpack.c.bf16 %v341_v22, %v340_v21  ;;  %v1949_v26 = vpack.c.bf16 %v343_v25, %v342_v24  ;;  %v344_v27 = vld [vmem:[%s2318_s3 + $0x50] sm:$0xff]  ;;  %v345_v28 = vld [vmem:[%s2318_s3 + $0x58] sm:$0xff]  ;;  %v346_v30 = vld [vmem:[%s2318_s3 + $0x60] sm:$0xff]  ;;  %s2684_s17 = sld [smem:[#allocation9_spill]]  ;;  %s2686_s25 = sld [smem:[#allocation13_spill]]  ;;  %vm1427_vm7 = vcmask 89088  }
  0x40   :  { %1667 = vmatmul.mubr.msk.f32.vlgmr.msra.gmra.mrb[0].mxu0 %vm154_vm2, %v142_v19  ;;  %1940 = vmatpush3.bf16.msra.mxu1 %v1937_v16  ;;  %v1953_v29 = vpack.c.bf16 %v345_v28, %v344_v27  ;;  %v347_v31 = vld [vmem:[%s2318_s3 + $0x68] sm:$0xff]  ;;  %v348_v33 = vld [vmem:[%s2318_s3 + $0x70] sm:$0xff]  ;;  %v349_v34 = vld [vmem:[%s2318_s3 + $0x78] sm:$0xff]  ;;  %s2688_s3 = sld [smem:[#allocation18_spill]]  ;;  %s2694_s13 = sld [smem:[#allocation20_spill]]  ;;  %vm1430_vm8 = vcmask 138240  }
  0x41   :  { %1942 = vmatprep.subr.bf16.mxu1 %v1941_v20  ;;  %v1957_v32 = vpack.c.bf16 %v347_v31, %v346_v30  ;;  %v1961_v35 = vpack.c.bf16 %v349_v34, %v348_v33  ;;  %v436_v36 = vld [vmem:[%s2328_s14] sm:$0xff]  ;;  %v437_v37 = vld [vmem:[%s2328_s14 + $0x8] sm:$0xff]  ;;  %v438_v38 = vld [vmem:[%s2328_s14 + $0x10] sm:$0xff]  ;;  %s2271_s10 = smov 17   ;;  %vm1433_vm9 = vcmask 220160  }
  0x42   :  { %v1965_v39 = vpack.c.bf16 %v437_v37, %v436_v36  ;;  %v439_v40 = vld [vmem:[%s2328_s14 + $0x18] sm:$0xff]  ;;  %v440_v42 = vld [vmem:[%s2328_s14 + $0x20] sm:$0xff]  ;;  %v441_v43 = vld [vmem:[%s2328_s14 + $0x28] sm:$0xff] }
  0x43   :  { %v1969_v41 = vpack.c.bf16 %v439_v40, %v438_v38  ;;  %v1973_v44 = vpack.c.bf16 %v441_v43, %v440_v42  ;;  %v442_v45 = vld [vmem:[%s2328_s14 + $0x30] sm:$0xff]  ;;  %v443_v46 = vld [vmem:[%s2328_s14 + $0x38] sm:$0xff]  ;;  %v444_v48 = vld [vmem:[%s2328_s14 + $0x40] sm:$0xff] }
  0x44   :  { %1944 = vmatpush3.bf16.msra.mxu1 %v1941_v20  ;;  %1966 = vmatprep.subr.bf16.mxu0 %v1965_v39  ;;  %v1977_v47 = vpack.c.bf16 %v443_v46, %v442_v45  ;;  %v445_v49 = vld [vmem:[%s2328_s14 + $0x48] sm:$0xff]  ;;  %v446_v51 = vld [vmem:[%s2328_s14 + $0x50] sm:$0xff]  ;;  %v447_v52 = vld [vmem:[%s2328_s14 + $0x58] sm:$0xff] }
  0x45   :  { %1946 = vmatprep.subr.bf16.mxu1 %v1945_v23  ;;  %1968 = vmatpush3.bf16.msra.mxu0 %v1965_v39  ;;  %v1981_v50 = vpack.c.bf16 %v445_v49, %v444_v48  ;;  %v1985_v53 = vpack.c.bf16 %v447_v52, %v446_v51  ;;  %v448_v54 = vld [vmem:[%s2328_s14 + $0x60] sm:$0xff]  ;;  %v449_v55 = vld [vmem:[%s2328_s14 + $0x68] sm:$0xff]  ;;  %v450_v5 = vld [vmem:[%s2328_s14 + $0x70] sm:$0xff] }
  0x46   :  { %1970 = vmatprep.subr.bf16.mxu0 %v1969_v41  ;;  %v1989_v56 = vpack.c.bf16 %v449_v55, %v448_v54  ;;  %v1490_v59 = vld [vmem:[%s2313_s29] ss:$0 sm:$0xff]  ;;  %v451_v6 = vld [vmem:[%s2328_s14 + $0x78] sm:$0xff]  ;;  %v681_v9 = vld [vmem:[%s2356_s20 + $0x8] sm:$0xff]  ;;  %s2687_s29 = sld [smem:[#allocation16_spill]]  ;;  %s2690_s14 = sld [smem:[#allocation15_spill]] }
  0x47   :  { %v1487_v60 = vld [vmem:[%s2303_s21] ss:$0 sm:$0xff]  ;;  %v1993_v7 = vpack.c.bf16 %v451_v6, %v450_v5  ;;  %v682_v13 = vld [vmem:[%s2356_s20 + $0x10] sm:$0xff]  ;;  %v683_v14 = vld [vmem:[%s2356_s20 + $0x18] sm:$0xff]  ;;  %s2685_s21 = sld [smem:[#allocation10_spill]] }
  0x48   :  { %1948 = vmatpush3.bf16.msra.mxu1 %v1945_v23  ;;  %v680_v8 = vld [vmem:[%s2356_s20] sm:$0xff]  ;;  %v2017_v18 = vpack.c.bf16 %v683_v14, %v682_v13  ;;  %v685_v20 = vld [vmem:[%s2356_s20 + $0x28] sm:$0xff]  ;;  %v686_v22 = vld [vmem:[%s2356_s20 + $0x30] sm:$0xff] }
  0x49   :  { %1950 = vmatprep.subr.bf16.mxu1 %v1949_v26  ;;  %1972 = vmatpush3.bf16.msra.mxu0 %v1969_v41  ;;  %v2013_v10 = vpack.c.bf16 %v681_v9, %v680_v8  ;;  %v1494_v11 = vld [vmem:[%s2323_s8] ss:$0 sm:$0xff]  ;;  %v687_v23 = vld [vmem:[%s2356_s20 + $0x38] sm:$0xff]  ;;  %v690_v28 = vld [vmem:[%s2356_s20 + $0x50] sm:$0xff]  ;;  %s2689_s8 = sld [smem:[#allocation14_spill]] }
  0x4a   :  { %1974 = vmatprep.subr.bf16.mxu0 %v1973_v44  ;;  %v684_v19 = vld [vmem:[%s2356_s20 + $0x20] sm:$0xff]  ;;  %v2025_v24 = vpack.c.bf16 %v687_v23, %v686_v22  ;;  %v694_v34 = vld [vmem:[%s2356_s20 + $0x70] sm:$0xff]  ;;  %v458_v9 = vld [vmem:[%s2348_s6 + $0x18] sm:$0xff] }
  0x4b   :  { %v2021_v21 = vpack.c.bf16 %v685_v20, %v684_v19  ;;  %v688_v25 = vld [vmem:[%s2356_s20 + $0x40] sm:$0xff]  ;;  %v457_v8 = vld [vmem:[%s2348_s6 + $0x10] sm:$0xff] }
  0x4c   :  { %1952 = vmatpush3.bf16.msra.mxu1 %v1949_v26  ;;  %v689_v26 = vld [vmem:[%s2356_s20 + $0x48] sm:$0xff]  ;;  %v692_v31 = vld [vmem:[%s2356_s20 + $0x60] sm:$0xff]  ;;  %v461_v23 = vld [vmem:[%s2348_s6 + $0x30] sm:$0xff] }
  0x4d   :  { %1954 = vmatprep.subr.bf16.mxu1 %v1953_v29  ;;  %1976 = vmatpush3.bf16.msra.mxu0 %v1973_v44  ;;  %v2029_v27 = vpack.c.bf16 %v689_v26, %v688_v25  ;;  %v1495_v37 = vld [vmem:[%s2333_s19] ss:$0 sm:$0xff]  ;;  %s2691_s19 = sld [smem:[#allocation19_spill]] }
  0x4e   :  { %1978 = vmatprep.subr.bf16.mxu0 %v1977_v47  ;;  %v1501_v46 = vld [vmem:[%s2361_s27] ss:$0 sm:$0xff]  ;;  %s2270_s27 = smov 11  }
  0x50   :  { %1956 = vmatpush3.bf16.msra.mxu1 %v1953_v29  ;;  %v691_v29 = vld [vmem:[%s2356_s20 + $0x58] sm:$0xff] }
  0x51   :  { %1958 = vmatprep.subr.bf16.mxu1 %v1957_v32  ;;  %1980 = vmatpush3.bf16.msra.mxu0 %v1977_v47  ;;  %v2033_v30 = vpack.c.bf16 %v691_v29, %v690_v28  ;;  %v700_v28 = vld [vmem:[%s2376_s30 + $0x8] sm:$0xff] }
  0x52   :  { %1982 = vmatprep.subr.bf16.mxu0 %v1981_v50 }
  0x54   :  { %1960 = vmatpush3.bf16.msra.mxu1 %v1957_v32  ;;  %v693_v32 = vld [vmem:[%s2356_s20 + $0x68] sm:$0xff] }
  0x55   :  { %1962 = vmatprep.subr.bf16.mxu1 %v1961_v35  ;;  %1984 = vmatpush3.bf16.msra.mxu0 %v1981_v50  ;;  %v2037_v33 = vpack.c.bf16 %v693_v32, %v692_v31 }
  0x56   :  { %1986 = vmatprep.subr.bf16.mxu0 %v1985_v53 }
  0x58   :  { %1964 = vmatpush3.bf16.msra.mxu1 %v1961_v35  ;;  %v695_v35 = vld [vmem:[%s2356_s20 + $0x78] sm:$0xff]  ;;  %s2269_s20 = smov 1  }
  0x59   :  { %1988 = vmatpush3.bf16.msra.mxu0 %v1985_v53  ;;  %v2041_v36 = vpack.c.bf16 %v695_v35, %v694_v34 }
  0x5a   :  { %1990 = vmatprep.subr.bf16.mxu0 %v1989_v56 }
  0x5d   :  { %1992 = vmatpush3.bf16.msra.mxu0 %v1989_v56 }
  0x5e   :  { %1994 = vmatprep.subr.bf16.mxu0 %v1993_v7 }
  0x61   :  { %1996 = vmatpush3.bf16.msra.mxu0 %v1993_v7 }
  0x62   :  { %2014 = vmatprep.subr.bf16.mxu0 %v2013_v10 }
 0x10d   :  { %v1673_v57 = vpop.f32.mrb[0].mxu1 }
 0x10e   :  { %v323_v58 = vpop.f32.mrb[1].mxu1  ;;  %v329_v63 = vadd.f32 %v1673_v57, %v1490_v59 }
 0x10f   :  { %v324_v62 = vadd.f32 %v1490_v59, %v323_v58 }
 0x113   :  { %v1668_v61 = vpop.f32.mrb[0].mxu0 }
 0x114   :  { %v2493_v0 = vadd.f32 %v1668_v61, %v1487_v60  ;;  %v227_v1 = vpop.f32.mrb[1].mxu0 }
 0x115   :  { %v2495_v2 = vadd.f32 %v1487_v60, %v227_v1 }
 0x116   :  { %v333_v4 = vadd.f32 %v329_v63, %v2493_v0 }
 0x117   :  { %v332_v3 = vadd.f32 %v324_v62, %v2495_v2 }
 0x119   :  { %1706 = vmatprep.mubr.f32.mxu1 %v332_v3  ;;  %v455_v3 = vld [vmem:[%s2348_s6] sm:$0xff] }
 0x11a   :  { %1707 = vmatmul.mubr.f32.vlgmr.msra.gmra.mrb[2].mxu1 %v333_v4  ;;  %v456_v4 = vld [vmem:[%s2348_s6 + $0x8] sm:$0xff] }
 0x11b   :  { %v1997_v5 = vpack.c.bf16 %v456_v4, %v455_v3  ;;  %v1502_v3 = vld [vmem:[%s2684_s17] ss:$0 sm:$0xff] }
 0x11d   :  { %1998 = vmatprep.subr.bf16.mxu1 %v1997_v5 }
 0x11e   :  { %2000 = vmatpush3.bf16.msra.mxu1 %v1997_v5  ;;  %v1503_v5 = vld [vmem:[%s2685_s21] ss:$0 sm:$0xff] }
 0x1ed   :  { %v1708_v12 = vpop.f32.mrb[2].mxu1 }
 0x1ee   :  { %v423_v15 = vpop.f32.mrb[3].mxu1  ;;  %v2508_v17 = vadd.f32 %v1708_v12, %v1494_v11 }
 0x1ef   :  { %v2506_v16 = vadd.f32 %v1494_v11, %v423_v15  ;;  %v459_v15 = vld [vmem:[%s2348_s6 + $0x20] sm:$0xff] }
 0x1f1   :  { %1741 = vmatprep.mubr.f32.mxu0 %v2506_v16 }
 0x1f2   :  { %1742 = vmatmul.mubr.f32.vlgmr.msra.gmra.mrb[2].mxu0 %v2508_v17 }
 0x1f3   :  { %2016 = vmatpush3.bf16.msra.mxu0 %v2013_v10  ;;  %1795 = vmatprep.mubr.f32.mxu0 %v2506_v16  ;;  %v2001_v10 = vpack.c.bf16 %v458_v9, %v457_v8 }
 0x1f4   :  { %2018 = vmatprep.subr.bf16.mxu0 %v2017_v18 }
 0x1f5   :  { %2002 = vmatprep.subr.bf16.mxu1 %v2001_v10 }
 0x1f6   :  { %2004 = vmatpush3.bf16.msra.mxu1 %v2001_v10  ;;  %v922_v10 = vld [vmem:[%s2683_s9 + $0x10] sm:$0xff] }
 0x1f7   :  { %2020 = vmatpush3.bf16.msra.mxu0 %v2017_v18  ;;  %v460_v18 = vld [vmem:[%s2348_s6 + $0x28] sm:$0xff] }
 0x1f8   :  { %2022 = vmatprep.subr.bf16.mxu0 %v2021_v21  ;;  %v2005_v19 = vpack.c.bf16 %v460_v18, %v459_v15  ;;  %v924_v18 = vld [vmem:[%s2683_s9 + $0x20] sm:$0xff] }
 0x1fa   :  { %2006 = vmatprep.subr.bf16.mxu1 %v2005_v19 }
 0x1fb   :  { %2024 = vmatpush3.bf16.msra.mxu0 %v2021_v21  ;;  %2008 = vmatpush3.bf16.msra.mxu1 %v2005_v19  ;;  %v925_v19 = vld [vmem:[%s2683_s9 + $0x28] sm:$0xff] }
 0x1fc   :  { %2026 = vmatprep.subr.bf16.mxu0 %v2025_v24 }
 0x1ff   :  { %2028 = vmatpush3.bf16.msra.mxu0 %v2025_v24  ;;  %v462_v24 = vld [vmem:[%s2348_s6 + $0x38] sm:$0xff]  ;;  %s2693_s6 = sld [smem:[#allocation17_spill]] }
 0x200   :  { %2030 = vmatprep.subr.bf16.mxu0 %v2029_v27  ;;  %v2009_v25 = vpack.c.bf16 %v462_v24, %v461_v23  ;;  %v928_v23 = vld [vmem:[%s2683_s9 + $0x40] sm:$0xff]  ;;  %v929_v24 = vld [vmem:[%s2683_s9 + $0x48] sm:$0xff] }
 0x202   :  { %2010 = vmatprep.subr.bf16.mxu1 %v2009_v25 }
 0x203   :  { %2032 = vmatpush3.bf16.msra.mxu0 %v2029_v27  ;;  %2012 = vmatpush3.bf16.msra.mxu1 %v2009_v25  ;;  %v699_v27 = vld [vmem:[%s2376_s30] sm:$0xff]  ;;  %v2077_v25 = vpack.c.bf16 %v929_v24, %v928_v23 }
 0x204   :  { %2034 = vmatprep.subr.bf16.mxu0 %v2033_v30  ;;  %v2045_v29 = vpack.c.bf16 %v700_v28, %v699_v27  ;;  %v931_v27 = vld [vmem:[%s2683_s9 + $0x58] sm:$0xff]  ;;  %v932_v28 = vld [vmem:[%s2683_s9 + $0x60] sm:$0xff] }
 0x206   :  { %2046 = vmatprep.subr.bf16.mxu1 %v2045_v29 }
 0x207   :  { %2036 = vmatpush3.bf16.msra.mxu0 %v2033_v30 }
 0x208   :  { %2038 = vmatprep.subr.bf16.mxu0 %v2037_v33 }
 0x20b   :  { %2040 = vmatpush3.bf16.msra.mxu0 %v2037_v33 }
 0x20c   :  { %2042 = vmatprep.subr.bf16.mxu0 %v2041_v36 }
 0x20f   :  { %2044 = vmatpush3.bf16.msra.mxu0 %v2041_v36 }
 0x212   :  { %1796 = vmatmul.mubr.f32.vlgmr.msra.gmra.mrb[4].mxu0 %v2508_v17 }
 0x2c5   :  { %v1743_v38 = vpop.f32.mrb[2].mxu0 }
 0x2c6   :  { %v536_v39 = vpop.f32.mrb[3].mxu0  ;;  %v542_v40 = vadd.f32 %v1743_v38, %v1495_v37 }
 0x2c7   :  { %v537_v41 = vadd.f32 %v1495_v37, %v536_v39  ;;  %v1496_v37 = vld [vmem:[%s2681_s0] ss:$0 sm:$0xff] }
 0x2c8   :  { %v546_v43 = vmax.f32 %v542_v40, 0.0  ;;  %v1497_v39 = vld [vmem:[%s2682_s5] ss:$0 sm:$0xff] }
 0x2c9   :  { %v545_v42 = vmax.f32 %v537_v41, 0.0 }
 0x2ca   :  { %v551_v45 = vsel %vm547_vm3, %v546_v43, 0.0 }
 0x2cb   :  { %v548_v44 = vsel %vm547_vm3, %v545_v42, 0.0 }
 0x2cc   :  { %549 = vadd.xlane.f32.xlu0 %v548_v44  ;;  %v701_v44 = vld [vmem:[%s2376_s30 + $0x10] sm:$0xff] }
 0x2d0   :  { %552 = vadd.xlane.f32.xlu0 %v551_v45  ;;  %v702_v45 = vld [vmem:[%s2376_s30 + $0x18] sm:$0xff] }
 0x2e5   :  { %v1797_v47 = vpop.f32.mrb[4].mxu0 }
 0x2e6   :  { %v780_v48 = vpop.f32.mrb[5].mxu0  ;;  %v786_v49 = vadd.f32 %v1797_v47, %v1501_v46 }
 0x2e7   :  { %v781_v50 = vadd.f32 %v1501_v46, %v780_v48  ;;  %v2049_v48 = vpack.c.bf16 %v702_v45, %v701_v44 }
 0x2e8   :  { %v790_v52 = vmax.f32 %v786_v49, 0.0  ;;  %v703_v49 = vld [vmem:[%s2376_s30 + $0x20] sm:$0xff] }
 0x2e9   :  { %v789_v51 = vmax.f32 %v781_v50, 0.0  ;;  %v704_v50 = vld [vmem:[%s2376_s30 + $0x28] sm:$0xff] }
 0x2ea   :  { %v794_v54 = vsel %vm547_vm3, %v790_v52, 0.0 }
 0x2eb   :  { %v791_v53 = vsel %vm547_vm3, %v789_v51, 0.0 }
 0x2ec   :  { %792 = vadd.xlane.f32.xlu1 %v791_v53  ;;  %v706_v53 = vld [vmem:[%s2376_s30 + $0x38] sm:$0xff] }
 0x2f0   :  { %795 = vadd.xlane.f32.xlu1 %v794_v54 }
 0x359   :  { %v550_v55 = vpop.xlane.xlu0 %549 }
 0x35a   :  { %v555_v56 = vmul.f32 0.015625, %v550_v55 }
 0x35c   :  { %v557_v57 = vsub.f32 %v545_v42, %v555_v56 }
 0x35d   :  { %v553_v58 = vpop.xlane.xlu0 %552 }
 0x35e   :  { %v556_v59 = vmul.f32 0.015625, %v553_v58  ;;  %v559_v60 = vmul.f32 %v557_v57, %v557_v57  ;;  %v921_v58 = vld [vmem:[%s2683_s9 + $0x8] sm:$0xff] }
 0x360   :  { %v558_v61 = vsub.f32 %v546_v43, %v556_v59  ;;  %v561_v62 = vsel %vm547_vm3, %v559_v60, 0.0 }
 0x361   :  { %562 = vadd.xlane.f32.xlu0 %v561_v62 }
 0x362   :  { %v560_v63 = vmul.f32 %v558_v61, %v558_v61 }
 0x364   :  { %v564_v1 = vsel %vm547_vm3, %v560_v63, 0.0 }
 0x365   :  { %565 = vadd.xlane.f32.xlu1 %v564_v1 }
 0x379   :  { %v793_v6 = vpop.xlane.xlu1 %792 }
 0x37a   :  { %v797_v7 = vmul.f32 0.015625, %v793_v6 }
 0x37c   :  { %v2538_v11 = vsub.f32 %v789_v51, %v797_v7  ;;  %v2053_v51 = vpack.c.bf16 %v704_v50, %v703_v49 }
 0x37d   :  { %v796_v12 = vpop.xlane.xlu1 %795 }
 0x37e   :  { %v798_v13 = vmul.f32 0.015625, %v796_v12  ;;  %v801_v14 = vmul.f32 %v2538_v11, %v2538_v11  ;;  %v923_v12 = vld [vmem:[%s2683_s9 + $0x18] sm:$0xff] }
 0x37f   :  { %v2065_v15 = vpack.c.bf16 %v923_v12, %v922_v10 }
 0x380   :  { %v2544_v20 = vsub.f32 %v790_v52, %v798_v13  ;;  %v803_v21 = vsel %vm547_vm3, %v801_v14, 0.0  ;;  %v705_v52 = vld [vmem:[%s2376_s30 + $0x30] sm:$0xff]  ;;  %s2692_s30 = sld [smem:[#allocation11_spill]] }
 0x381   :  { %804 = vadd.xlane.f32.xlu0 %v803_v21  ;;  %v2057_v55 = vpack.c.bf16 %v706_v53, %v705_v52  ;;  %v927_v21 = vld [vmem:[%s2683_s9 + $0x38] sm:$0xff] }
 0x382   :  { %v802_v22 = vmul.f32 %v2544_v20, %v2544_v20 }
 0x384   :  { %v806_v26 = vsel %vm547_vm3, %v802_v22, 0.0 }
 0x385   :  { %807 = vadd.xlane.f32.xlu1 %v806_v26  ;;  %v930_v26 = vld [vmem:[%s2683_s9 + $0x50] sm:$0xff] }
 0x3ee   :  { %v563_v30 = vpop.xlane.xlu0 %562 }
 0x3ef   :  { %v567_v31 = vmul.f32 0.015625, %v563_v30 }
 0x3f1   :  { %v569_v32 = vadd.f32 1e-12, %v567_v31  ;;  %v934_v31 = vld [vmem:[%s2683_s9 + $0x70] sm:$0xff] }
 0x3f2   :  { %v566_v33 = vpop.xlane.xlu1 %565 }
 0x3f3   :  { %2196 = vrsqrt.f32 %v569_v32  ;;  %v568_v34 = vmul.f32 0.015625, %v566_v33  ;;  %v935_v32 = vld [vmem:[%s2683_s9 + $0x78] sm:$0xff] }
 0x3f4   :  { %v2089_v33 = vpack.c.bf16 %v935_v32, %v934_v31  ;;  %v1166_v32 = vld [vmem:[%s2688_s3 + $0x30] sm:$0xff] }
 0x3f5   :  { %v570_v35 = vadd.f32 1e-12, %v568_v34 }
 0x3f7   :  { %2198 = vrsqrt.f32 %v570_v35 }
 0x3fd   :  { %v2197_v36 = vpop.eup %2196 }
 0x3fe   :  { %v573_v38 = vmul.f32 %v2197_v36, %v557_v57  ;;  %v920_v57 = vld [vmem:[%s2683_s9] sm:$0xff] }
 0x400   :  { %v581_v40 = vmul.f32 %v1496_v37, %v573_v38  ;;  %v1507_v38 = vld [vmem:[%s2686_s25] ss:$0 sm:$0xff] }
 0x401   :  { %v2199_v41 = vpop.eup %2198 }
 0x402   :  { %v574_v42 = vmul.f32 %v2199_v41, %v558_v61  ;;  %v589_v43 = vadd.f32 %v1497_v39, %v581_v40  ;;  %v2061_v61 = vpack.c.bf16 %v921_v58, %v920_v57  ;;  %v940_v57 = vld [vmem:[%s2687_s29 + $0x8] sm:$0xff] }
 0x404   :  { %v582_v46 = vmul.f32 %v1496_v37, %v574_v42  ;;  %1760 = vmatprep.mubr.msk.f32.mxu1 %vm547_vm3, %v589_v43 }
 0x406   :  { %v590_v47 = vadd.f32 %v1497_v39, %v582_v46 }
 0x408   :  { %1761 = vmatmul.mubr.msk.f32.vlgmr.msra.gmra.mrb[4].mxu1 %vm547_vm3, %v590_v47 }
 0x409   :  { %2048 = vmatpush3.bf16.msra.mxu1 %v2045_v29  ;;  %v933_v29 = vld [vmem:[%s2683_s9 + $0x68] sm:$0xff] }
 0x40a   :  { %2050 = vmatprep.subr.bf16.mxu1 %v2049_v48  ;;  %v2085_v30 = vpack.c.bf16 %v933_v29, %v932_v28  ;;  %v1164_v29 = vld [vmem:[%s2688_s3 + $0x20] sm:$0xff] }
 0x40d   :  { %2052 = vmatpush3.bf16.msra.mxu1 %v2049_v48 }
 0x40e   :  { %v805_v54 = vpop.xlane.xlu0 %804  ;;  %2054 = vmatprep.subr.bf16.mxu1 %v2053_v51 }
 0x40f   :  { %v809_v56 = vmul.f32 0.015625, %v805_v54 }
 0x411   :  { %v811_v59 = vadd.f32 1e-12, %v809_v56  ;;  %2056 = vmatpush3.bf16.msra.mxu1 %v2053_v51  ;;  %v939_v56 = vld [vmem:[%s2687_s29] sm:$0xff] }
 0x412   :  { %v808_v60 = vpop.xlane.xlu1 %807  ;;  %2058 = vmatprep.subr.bf16.mxu1 %v2057_v55  ;;  %v2093_v58 = vpack.c.bf16 %v940_v57, %v939_v56 }
 0x413   :  { %2200 = vrsqrt.f32 %v811_v59  ;;  %v810_v62 = vmul.f32 0.015625, %v808_v60  ;;  %v941_v59 = vld [vmem:[%s2687_s29 + $0x10] sm:$0xff]  ;;  %v942_v60 = vld [vmem:[%s2687_s29 + $0x18] sm:$0xff] }
 0x414   :  { %2094 = vmatprep.subr.bf16.mxu0 %v2093_v58 }
 0x415   :  { %v812_v63 = vadd.f32 1e-12, %v810_v62  ;;  %2060 = vmatpush3.bf16.msra.mxu1 %v2057_v55  ;;  %2096 = vmatpush3.bf16.msra.mxu0 %v2093_v58  ;;  %v943_v62 = vld [vmem:[%s2687_s29 + $0x20] sm:$0xff] }
 0x416   :  { %2062 = vmatprep.subr.bf16.mxu1 %v2061_v61 }
 0x417   :  { %2202 = vrsqrt.f32 %v812_v63  ;;  %v944_v63 = vld [vmem:[%s2687_s29 + $0x28] sm:$0xff] }
 0x41d   :  { %v2201_v1 = vpop.eup %2200 }
 0x41e   :  { %v815_v4 = vmul.f32 %v2201_v1, %v2538_v11  ;;  %v2069_v11 = vpack.c.bf16 %v925_v19, %v924_v18  ;;  %v2101_v1 = vpack.c.bf16 %v944_v63, %v943_v62  ;;  %v1508_v19 = vld [vmem:[%s2689_s8] ss:$0 sm:$0xff] }
 0x420   :  { %v823_v6 = vmul.f32 %v1502_v3, %v815_v4  ;;  %v946_v4 = vld [vmem:[%s2687_s29 + $0x38] sm:$0xff] }
 0x421   :  { %v2203_v7 = vpop.eup %2202 }
 0x422   :  { %v816_v8 = vmul.f32 %v2203_v7, %v2544_v20  ;;  %v831_v9 = vadd.f32 %v1503_v5, %v823_v6  ;;  %v926_v20 = vld [vmem:[%s2683_s9 + $0x30] sm:$0xff]  ;;  %v1160_v6 = vld [vmem:[%s2688_s3] sm:$0xff]  ;;  %v1161_v7 = vld [vmem:[%s2688_s3 + $0x8] sm:$0xff] }
 0x423   :  { %v2073_v22 = vpack.c.bf16 %v927_v21, %v926_v20 }
 0x424   :  { %v824_v13 = vmul.f32 %v1502_v3, %v816_v8  ;;  %1814 = vmatprep.mubr.msk.f32.mxu1 %vm547_vm3, %v831_v9  ;;  %v945_v3 = vld [vmem:[%s2687_s29 + $0x30] sm:$0xff]  ;;  %v2109_v8 = vpack.c.bf16 %v1161_v7, %v1160_v6  ;;  %v1504_v7 = vld [vmem:[%s2692_s30] ss:$0 sm:$0xff] }
 0x426   :  { %v832_v14 = vadd.f32 %v1503_v5, %v824_v13  ;;  %v2105_v5 = vpack.c.bf16 %v946_v4, %v945_v3 }
 0x428   :  { %1815 = vmatmul.mubr.msk.f32.vlgmr.msra.gmra.mrb[6].mxu1 %vm547_vm3, %v832_v14 }
 0x429   :  { %2064 = vmatpush3.bf16.msra.mxu1 %v2061_v61  ;;  %1849 = vmatprep.mubr.f32.mxu1 %v2506_v16  ;;  %v2081_v16 = vpack.c.bf16 %v931_v27, %v930_v26  ;;  %v2097_v61 = vpack.c.bf16 %v942_v60, %v941_v59  ;;  %v1163_v26 = vld [vmem:[%s2688_s3 + $0x18] sm:$0xff] }
 0x42a   :  { %2066 = vmatprep.subr.bf16.mxu1 %v2065_v15 }
 0x42b   :  { %2098 = vmatprep.subr.bf16.mxu0 %v2097_v61 }
 0x42c   :  { %2100 = vmatpush3.bf16.msra.mxu0 %v2097_v61 }
 0x42d   :  { %2068 = vmatpush3.bf16.msra.mxu1 %v2065_v15  ;;  %2102 = vmatprep.subr.bf16.mxu0 %v2101_v1 }
 0x42e   :  { %2070 = vmatprep.subr.bf16.mxu1 %v2069_v11 }
 0x430   :  { %2104 = vmatpush3.bf16.msra.mxu0 %v2101_v1 }
 0x431   :  { %2072 = vmatpush3.bf16.msra.mxu1 %v2069_v11  ;;  %2106 = vmatprep.subr.bf16.mxu0 %v2105_v5 }
 0x432   :  { %2074 = vmatprep.subr.bf16.mxu1 %v2073_v22 }
 0x434   :  { %2108 = vmatpush3.bf16.msra.mxu0 %v2105_v5 }
 0x435   :  { %2076 = vmatpush3.bf16.msra.mxu1 %v2073_v22  ;;  %2110 = vmatprep.subr.bf16.mxu0 %v2109_v8  ;;  %v1509_v22 = vld [vmem:[%s2690_s14] ss:$0 sm:$0xff] }
 0x436   :  { %2078 = vmatprep.subr.bf16.mxu1 %v2077_v25 }
 0x439   :  { %2080 = vmatpush3.bf16.msra.mxu1 %v2077_v25  ;;  %v1162_v25 = vld [vmem:[%s2688_s3 + $0x10] sm:$0xff] }
 0x43a   :  { %2082 = vmatprep.subr.bf16.mxu1 %v2081_v16  ;;  %v2113_v28 = vpack.c.bf16 %v1163_v26, %v1162_v25 }
 0x43d   :  { %2084 = vmatpush3.bf16.msra.mxu1 %v2081_v16 }
 0x43e   :  { %2086 = vmatprep.subr.bf16.mxu1 %v2085_v30 }
 0x441   :  { %2088 = vmatpush3.bf16.msra.mxu1 %v2085_v30  ;;  %v1165_v30 = vld [vmem:[%s2688_s3 + $0x28] sm:$0xff] }
 0x442   :  { %2090 = vmatprep.subr.bf16.mxu1 %v2089_v33  ;;  %v2117_v31 = vpack.c.bf16 %v1165_v30, %v1164_v29 }
 0x445   :  { %2092 = vmatpush3.bf16.msra.mxu1 %v2089_v33  ;;  %v1167_v33 = vld [vmem:[%s2688_s3 + $0x38] sm:$0xff] }
 0x448   :  { %1850 = vmatmul.mubr.f32.vlgmr.msra.gmra.mrb[8].mxu1 %v2508_v17 }
 0x4db   :  { %v2588_v34 = vpop.f32.mrb[4].mxu1 }
 0x4dc   :  { %v2590_v35 = vpop.f32.mrb[5].mxu1 }
 0x4fb   :  { %v2592_v36 = vpop.f32.mrb[6].mxu1 }
 0x4fc   :  { %v2594_v37 = vpop.f32.mrb[7].mxu1 }
 0x51b   :  { %v1851_v39 = vpop.f32.mrb[8].mxu1 }
 0x51c   :  { %v1026_v40 = vadd.f32 %v1851_v39, %v1507_v38  ;;  %v1020_v41 = vpop.f32.mrb[9].mxu1  ;;  %v1168_v39 = vld [vmem:[%s2688_s3 + $0x40] sm:$0xff] }
 0x51d   :  { %v1021_v42 = vadd.f32 %v1507_v38, %v1020_v41  ;;  %v2121_v38 = vpack.c.bf16 %v1167_v33, %v1166_v32 }
 0x51e   :  { %v1030_v43 = vmax.f32 %v1026_v40, 0.0  ;;  %v1169_v40 = vld [vmem:[%s2688_s3 + $0x48] sm:$0xff] }
 0x51f   :  { %v1029_v44 = vmax.f32 %v1021_v42, 0.0  ;;  %v2125_v41 = vpack.c.bf16 %v1169_v40, %v1168_v39  ;;  %v1170_v42 = vld [vmem:[%s2688_s3 + $0x50] sm:$0xff]  ;;  %v1515_v39 = vld [vmem:[%s2431_s15] ss:$0 sm:$0xff]  ;;  %s2272_s15 = smov [#allocation3]  }
 0x520   :  { %v1034_v45 = vsel %vm547_vm3, %v1030_v43, 0.0 }
 0x521   :  { %1035 = vadd.xlane.f32.xlu1 %v1034_v45  ;;  %v1031_v17 = vsel %vm547_vm3, %v1029_v44, 0.0  ;;  %v1173_v45 = vld [vmem:[%s2688_s3 + $0x68] sm:$0xff] }
 0x522   :  { %1032 = vadd.xlane.f32.xlu0 %v1031_v17 }
 0x5ae   :  { %v1036_v46 = vpop.xlane.xlu1 %1035 }
 0x5af   :  { %v1038_v47 = vmul.f32 0.015625, %v1036_v46  ;;  %v1033_v48 = vpop.xlane.xlu0 %1032  ;;  %v1174_v46 = vld [vmem:[%s2688_s3 + $0x70] sm:$0xff] }
 0x5b0   :  { %v1037_v49 = vmul.f32 0.015625, %v1033_v48 }
 0x5b1   :  { %v1040_v50 = vsub.f32 %v1030_v43, %v1038_v47  ;;  %v1171_v43 = vld [vmem:[%s2688_s3 + $0x58] sm:$0xff] }
 0x5b2   :  { %v1039_v51 = vsub.f32 %v1029_v44, %v1037_v49  ;;  %v1172_v44 = vld [vmem:[%s2688_s3 + $0x60] sm:$0xff]  ;;  %v1175_v47 = vld [vmem:[%s2688_s3 + $0x78] sm:$0xff] }
 0x5b3   :  { %v1042_v52 = vmul.f32 %v1040_v50, %v1040_v50  ;;  %v2133_v17 = vpack.c.bf16 %v1173_v45, %v1172_v44  ;;  %v2137_v48 = vpack.c.bf16 %v1175_v47, %v1174_v46 }
 0x5b4   :  { %v1041_v53 = vmul.f32 %v1039_v51, %v1039_v51 }
 0x5b5   :  { %v1046_v54 = vsel %vm547_vm3, %v1042_v52, 0.0 }
 0x5b6   :  { %1047 = vadd.xlane.f32.xlu1 %v1046_v54  ;;  %v1043_v55 = vsel %vm547_vm3, %v1041_v53, 0.0 }
 0x5b7   :  { %1044 = vadd.xlane.f32.xlu0 %v1043_v55 }
 0x643   :  { %v1048_v9 = vpop.xlane.xlu1 %1047 }
 0x644   :  { %v1050_v10 = vmul.f32 0.015625, %v1048_v9  ;;  %v1045_v12 = vpop.xlane.xlu0 %1044  ;;  %v1510_v9 = vld [vmem:[%s2693_s6] ss:$0 sm:$0xff] }
 0x645   :  { %v1049_v13 = vmul.f32 0.015625, %v1045_v12  ;;  %v1180_v12 = vld [vmem:[%s2436_s22 + $0x8] sm:$0xff] }
 0x646   :  { %v1052_v14 = vadd.f32 1e-12, %v1050_v10  ;;  %v1179_v10 = vld [vmem:[%s2436_s22] sm:$0xff] }
 0x647   :  { %v1051_v15 = vadd.f32 1e-12, %v1049_v13 }
 0x648   :  { %2204 = vrsqrt.f32 %v1052_v14  ;;  %v2141_v14 = vpack.c.bf16 %v1180_v12, %v1179_v10 }
 0x649   :  { %2206 = vrsqrt.f32 %v1051_v15  ;;  %v912_v15 = vadd.f32 %v1504_v7, %v2594_v37  ;;  %v1185_v37 = vld [vmem:[%s2436_s22 + $0x30] sm:$0xff] }
 0x64a   :  { %2142 = vmatprep.subr.bf16.mxu1 %v2141_v14 }
 0x64b   :  { %2144 = vmatpush3.bf16.msra.mxu1 %v2141_v14 }
 0x652   :  { %v2205_v18 = vpop.eup %2204 }
 0x653   :  { %v2207_v11 = vpop.eup %2206  ;;  %v1056_v20 = vmul.f32 %v2205_v18, %v1040_v50  ;;  %v1181_v18 = vld [vmem:[%s2436_s22 + $0x10] sm:$0xff] }
 0x654   :  { %v1055_v21 = vmul.f32 %v2207_v11, %v1039_v51  ;;  %v1513_v51 = vld [vmem:[%s2691_s19] ss:$0 sm:$0xff] }
 0x655   :  { %v1064_v23 = vmul.f32 %v1508_v19, %v1056_v20  ;;  %v1183_v20 = vld [vmem:[%s2436_s22 + $0x20] sm:$0xff] }
 0x656   :  { %v1063_v24 = vmul.f32 %v1508_v19, %v1055_v21  ;;  %v1182_v19 = vld [vmem:[%s2436_s22 + $0x18] sm:$0xff]  ;;  %v1184_v21 = vld [vmem:[%s2436_s22 + $0x28] sm:$0xff] }
 0x657   :  { %v1072_v16 = vadd.f32 %v1509_v22, %v1064_v23  ;;  %v2145_v11 = vpack.c.bf16 %v1182_v19, %v1181_v18  ;;  %v1186_v23 = vld [vmem:[%s2436_s22 + $0x38] sm:$0xff]  ;;  %s2695_s22 = sld [smem:[#allocation6_spill]] }
 0x658   :  { %v1071_v27 = vadd.f32 %v1509_v22, %v1063_v24  ;;  %v2149_v22 = vpack.c.bf16 %v1184_v21, %v1183_v20  ;;  %v2153_v24 = vpack.c.bf16 %v1186_v23, %v1185_v37 }
 0x659   :  { %2146 = vmatprep.subr.bf16.mxu1 %v2145_v11 }
 0x65a   :  { %1868 = vmatprep.mubr.msk.f32.mxu0 %vm547_vm3, %v1071_v27  ;;  %2148 = vmatpush3.bf16.msra.mxu1 %v2145_v11 }
 0x65b   :  { %1869 = vmatmul.mubr.msk.f32.vlgmr.msra.gmra.mrb[6].mxu0 %vm547_vm3, %v1072_v16  ;;  %2150 = vmatprep.subr.bf16.mxu1 %v2149_v22 }
 0x65c   :  { %2112 = vmatpush3.bf16.msra.mxu0 %v2109_v8  ;;  %1903 = vmatprep.mubr.f32.mxu0 %v2495_v2  ;;  %v2129_v2 = vpack.c.bf16 %v1171_v43, %v1170_v42  ;;  %v917_v8 = vadd.f32 %v2592_v36, %v1504_v7 }
 0x65d   :  { %2114 = vmatprep.subr.bf16.mxu0 %v2113_v28 }
 0x65e   :  { %2152 = vmatpush3.bf16.msra.mxu1 %v2149_v22 }
 0x65f   :  { %2154 = vmatprep.subr.bf16.mxu1 %v2153_v24 }
 0x660   :  { %2116 = vmatpush3.bf16.msra.mxu0 %v2113_v28 }
 0x661   :  { %2118 = vmatprep.subr.bf16.mxu0 %v2117_v31 }
 0x662   :  { %2156 = vmatpush3.bf16.msra.mxu1 %v2153_v24 }
 0x664   :  { %2120 = vmatpush3.bf16.msra.mxu0 %v2117_v31  ;;  %v1514_v31 = vld [vmem:[%s2694_s13] ss:$0 sm:$0xff] }
 0x665   :  { %2122 = vmatprep.subr.bf16.mxu0 %v2121_v38 }
 0x668   :  { %2124 = vmatpush3.bf16.msra.mxu0 %v2121_v38 }
 0x669   :  { %2126 = vmatprep.subr.bf16.mxu0 %v2125_v41 }
 0x66c   :  { %2128 = vmatpush3.bf16.msra.mxu0 %v2125_v41 }
 0x66d   :  { %2130 = vmatprep.subr.bf16.mxu0 %v2129_v2 }
 0x670   :  { %2132 = vmatpush3.bf16.msra.mxu0 %v2129_v2  ;;  %v1516_v2 = vld [vmem:[%s2441_s1] ss:$0 sm:$0xff]  ;;  %s1443_s1 = sshll.u32 %s2272_s15, 4  ;;  %s1444_s1 = int_to_ptr.vmem [resolvable:$true] %s1443_s1 }
 0x671   :  { %2134 = vmatprep.subr.bf16.mxu0 %v2133_v17  ;;  %s2212_s11 = scalar_lea.vmem %s1444_s1, 256  ;;  %p2217_p1 = scmp.lt.s32.totalorder %s1444_s1, %s1444_s1 }
 0x672   :  { %p2213_p0 = scmp.ne.s32.totalorder %s1444_s1, %s2212_s11  ;;  %p2218_p2 = scmp.lt.s32.totalorder %s2212_s11, %s2212_s11 }
 0x674   :  { %2136 = vmatpush3.bf16.msra.mxu0 %v2133_v17  ;;  %p2219_p3 = por %p2218_p2, %p2217_p1 }
 0x675   :  { %2138 = vmatprep.subr.bf16.mxu0 %v2137_v48 }
 0x676   :  { %p2220_p4 = pnand %p2219_p3, %p2213_p0 }
 0x678   :  { %2140 = vmatpush3.bf16.msra.mxu0 %v2137_v48 }
 0x67b   :  { %1904 = vmatmul.mubr.f32.vlgmr.msra.gmra.mrb[8].mxu0 %v2493_v0 }
 0x72e   :  { %v1870_v49 = vpop.f32.mrb[6].mxu0 }
 0x72f   :  { %v1151_v50 = vpop.f32.mrb[7].mxu0  ;;  %v1157_v36 = vadd.f32 %v1870_v49, %v1510_v9  ;;  %v1498_v49 = vld [vmem:[#allocation2] ss:$0 sm:$0xff] }
 0x730   :  { %v1152_v13 = vadd.f32 %v1510_v9, %v1151_v50  ;;  %v433_v50 = vld [vmem:[%s2695_s22 + $0x8] sm:$0xff] }
 0x731   :  { %vm435_vm4 = vcmp.ne.s32.totalorder %v433_v50, 0 }
 0x74e   :  { %v1905_v52 = vpop.f32.mrb[8].mxu0 }
 0x74f   :  { %v1266_v53 = vadd.f32 %v1905_v52, %v1513_v51  ;;  %v1260_v54 = vpop.f32.mrb[9].mxu0  ;;  %v675_v52 = vadd.f32 %v2588_v34, %v1498_v49 }
 0x750   :  { %v1261_v55 = vadd.f32 %v1513_v51, %v1260_v54  ;;  %v432_v51 = vld [vmem:[%s2695_s22] sm:$0xff] }
 0x751   :  { %v1270_v56 = vmax.f32 %v1266_v53, 0.0  ;;  %v670_v53 = vadd.f32 %v1498_v49, %v2590_v35  ;;  %vm434_vm5 = vcmp.ne.s32.totalorder %v432_v51, 0 }
 0x752   :  { %v1269_v57 = vmax.f32 %v1261_v55, 0.0 }
 0x753   :  { %v1274_v58 = vsel %vm547_vm3, %v1270_v56, 0.0 }
 0x754   :  { %1275 = vadd.xlane.f32.xlu1 %v1274_v58  ;;  %v1271_v59 = vsel %vm547_vm3, %v1269_v57, 0.0 }
 0x755   :  { %1272 = vadd.xlane.f32.xlu0 %v1271_v59 }
 0x7e1   :  { %v1276_v60 = vpop.xlane.xlu1 %1275 }
 0x7e2   :  { %v1278_v61 = vmul.f32 0.015625, %v1276_v60  ;;  %v1273_v0 = vpop.xlane.xlu0 %1272 }
 0x7e3   :  { %v1277_v62 = vmul.f32 0.015625, %v1273_v0 }
 0x7e4   :  { %v1280_v63 = vsub.f32 %v1270_v56, %v1278_v61  ;;  %v679_v56 = vsel %vm435_vm4, %v675_v52, -inf }
 0x7e5   :  { %v1279_v1 = vsub.f32 %v1269_v57, %v1277_v62  ;;  %v678_v57 = vsel %vm434_vm5, %v670_v53, -inf }
 0x7e6   :  { %v1282_v3 = vmul.f32 %v1280_v63, %v1280_v63 }
 0x7e7   :  { %v1281_v4 = vmul.f32 %v1279_v1, %v1279_v1 }
 0x7e8   :  { %v1286_v5 = vsel %vm547_vm3, %v1282_v3, 0.0 }
 0x7e9   :  { %1287 = vadd.xlane.f32.xlu1 %v1286_v5  ;;  %v1283_v6 = vsel %vm547_vm3, %v1281_v4, 0.0 }
 0x7ea   :  { %1284 = vadd.xlane.f32.xlu0 %v1283_v6 }
 0x7fa   :  { %1404 = vrot.lane.b32.xlu1 %v917_v8, %s2269_s20 }
 0x7fe   :  { %1410 = vrot.lane.b32.xlu1 %v1152_v13, %s2270_s27 }
 0x800   :  { %1402 = vrot.lane.b32.xlu0 %v912_v15, %s2269_s20 }
 0x802   :  { %1412 = vrot.lane.b32.xlu1 %v1157_v36, %s2270_s27 }
 0x876   :  { %v1288_v25 = vpop.xlane.xlu1 %1287 }
 0x877   :  { %v1290_v26 = vmul.f32 0.015625, %v1288_v25  ;;  %v1285_v27 = vpop.xlane.xlu0 %1284 }
 0x878   :  { %v1289_v16 = vmul.f32 0.015625, %v1285_v27 }
 0x879   :  { %v1292_v28 = vadd.f32 1e-12, %v1290_v26 }
 0x87a   :  { %v1291_v29 = vadd.f32 1e-12, %v1289_v16  ;;  %v1405_v47 = vpop.permute.xlu1 %1404 }
 0x87b   :  { %2208 = vrsqrt.f32 %v1292_v28  ;;  %v1403_v55 = vpop.permute.xlu0 %1402  ;;  %v1426_v58 = vsel %vm1424_vm6, %v679_v56, %v1405_v47 }
 0x87c   :  { %2210 = vrsqrt.f32 %v1291_v29  ;;  %v1425_v59 = vsel %vm1424_vm6, %v678_v57, %v1403_v55 }
 0x87e   :  { %v1411_v48 = vpop.permute.xlu1 %1410 }
 0x87f   :  { %v1428_v0 = vsel %vm1427_vm7, %v1425_v59, %v1411_v48 }
 0x882   :  { %v1413_v54 = vpop.permute.xlu1 %1412 }
 0x883   :  { %v1429_v60 = vsel %vm1427_vm7, %v1426_v58, %v1413_v54 }
 0x885   :  { %v2209_v30 = vpop.eup %2208 }
 0x886   :  { %v2211_v32 = vpop.eup %2210  ;;  %v1296_v33 = vmul.f32 %v2209_v30, %v1280_v63 }
 0x887   :  { %v1295_v38 = vmul.f32 %v2211_v32, %v1279_v1 }
 0x888   :  { %v1304_v40 = vmul.f32 %v1514_v31, %v1296_v33 }
 0x889   :  { %v1303_v41 = vmul.f32 %v1514_v31, %v1295_v38 }
 0x88a   :  { %v1312_v43 = vadd.f32 %v1515_v39, %v1304_v40 }
 0x88b   :  { %v1311_v42 = vadd.f32 %v1515_v39, %v1303_v41 }
 0x88d   :  { %1922 = vmatprep.mubr.msk.f32.mxu1 %vm547_vm3, %v1311_v42 }
 0x88e   :  { %1923 = vmatmul.mubr.msk.f32.vlgmr.msra.gmra.mrb[10].mxu1 %vm547_vm3, %v1312_v43 }
 0x961   :  { %v1924_v44 = vpop.f32.mrb[10].mxu1 }
 0x962   :  { %v1397_v45 = vadd.f32 %v1924_v44, %v1516_v2  ;;  %v1391_v17 = vpop.f32.mrb[11].mxu1 }
 0x963   :  { %v1392_v46 = vadd.f32 %v1516_v2, %v1391_v17 }
 0x964   :  { %1420 = vrot.lane.b32.xlu1 %v1397_v45, %s2271_s10 }
 0x965   :  { %1418 = vrot.lane.b32.xlu0 %v1392_v46, %s2271_s10 }
 0x9d6   :  { %v1421_v61 = vpop.permute.xlu1 %1420 }
 0x9d7   :  { %v1432_v34 = vsel %vm1430_vm8, %v1429_v60, %v1421_v61  ;;  %v1419_v62 = vpop.permute.xlu0 %1418 }
 0x9d8   :  { %v1435_v35 = vsel %vm1433_vm9, %v1432_v34, 0.0  ;;  %v1431_v63 = vsel %vm1430_vm8, %v1428_v0, %v1419_v62 }
 0x9d9   :  { %1437 = vst [vmem:[#allocation3 + $0x8] sm:$0xff] %v1435_v35  ;;  %v1434_v1 = vsel %vm1433_vm9, %v1431_v63, 0.0 }
 0x9da   :  { %1436 = vst [vmem:[#allocation3] sm:$0xff] %v1434_v1 }
 0x9db   :  { %2223 = shalt.err (!%p2220_p4)
}
 0x9dc   :  { %s2224_s4 = scalar_lea.hbm %s2446_s7, 256 }
 0x9dd   :  { %p2225_p5 = scmp.ne.s32.totalorder %s2446_s7, %s2224_s4  ;;  %p2228_p6 = scmp.lt.u32.totalorder %s2224_s4, %s2446_s7 }
 0x9df   :  { %p2230_p7 = pnand %p2228_p6, %p2225_p5 }
 0x9e1   :  { %2233 = shalt.err (!%p2230_p7)
}
 0x9e2   :  { %s2273_s16 = smov 128   ;;  %s2274_s18 = smov 8  }
 0x9e3   :  { %1449 = dma.vmem_to_hbm [thread:$0]  %s1444_s1, 256, %s2446_s7, [#allocation4], %s2273_s16, %s2273_s16, %s2274_s18  }
 0x9e4   :  { %2234 = dma.done.wait [#allocation4], 256  }
 0x9e5   :  { %2235 = vsyncadd [#allocation4], 4294967040 }
 0x9e6   :  { %1453 = vsyncpa [#allocation4], 1 }

</bundles_post_ra>
